<compile_context>
chip_gen: v7x
topology: tpu7x:2x2x1
jax: 0.10.0
libtpu: 0.0.40
codegen_flags: <defaults>
</compile_context>

<pallas_src>
import functools

import jax
import jax.numpy as jnp
from jax.experimental import pallas as pl
from jax.experimental.pallas import tpu as pltpu


def _conv_bn_relu_kernel(x_ref, w_ref, shift_ref, o_ref, *,
                         NB, KH, KW, OH, OW, SH, SW, DH, DW, PH, PW,
                         Cin, Cout, use_relu):
    """NB batch elements per grid step.

    x_ref:     (NB, Cin, H, W)     unpadded NCHW input tile
    w_ref:     (Cout, KH*KW*Cin)   BN-scale-folded, im2col-ordered weights
    shift_ref: (Cout, 1)           folded BN shift + conv bias (or zeros)
    o_ref:     (NB, Cout, OH*OW)   lane-dense output (OH*OW on the lane axis)
    """
    x = x_ref[...].astype(jnp.float32)              # (NB, Cin, H, W)

    # In-kernel zero padding (avoids a full HBM pad pass in the wrapper).
    if PW > 0:
        zw = jnp.zeros(x.shape[:3] + (PW,), jnp.float32)
        x = jnp.concatenate([zw, x, zw], axis=3)
    if PH > 0:
        zh = jnp.zeros(x.shape[:2] + (PH, x.shape[3]), jnp.float32)
        x = jnp.concatenate([zh, x, zh], axis=2)    # (NB, Cin, HP, WP)

    w = w_ref[...]                                  # (Cout, KH*KW*Cin)
    shift = shift_ref[...]                          # (Cout, 1)

    for b in range(NB):                             # static unroll, NB is small
        xb = x[b]                                   # (Cin, HP, WP)
        # im2col: concatenate KH*KW strided taps along the K axis.
        taps = []
        for kh in range(KH):
            for kw in range(KW):
                h0 = kh * DH
                w0 = kw * DW
                patch = jax.lax.slice(
                    xb,
                    (0, h0, w0),
                    (Cin, h0 + (OH - 1) * SH + 1, w0 + (OW - 1) * SW + 1),
                    (1, SH, SW),
                )                                   # (Cin, OH, OW)
                taps.append(patch.reshape(Cin, OH * OW))
        pmat = jnp.concatenate(taps, axis=0)        # (KH*KW*Cin, OH*OW)

        # Single MXU matmul per image; output is lane-dense (Cout, OH*OW).
        y = jnp.dot(w, pmat, preferred_element_type=jnp.float32)
        y = y + shift                               # fused BN shift / conv bias
        if use_relu:
            y = jnp.maximum(y, 0.0)
        o_ref[b] = y.astype(o_ref.dtype)


def _pick_batch_block(n, max_nb=8):
    """Largest divisor of n (<= max_nb) that leaves >=2 grid steps when possible."""
    best = 1
    for nb in range(1, min(n, max_nb) + 1):
        if n % nb == 0 and (n // nb >= 2 or n <= 1):
            best = nb
    return best


def conv_block_forward(x_nchw, weight, conv_bias, bn_params, *,
                       stride=1, padding=0, dilation=1, groups=1,
                       use_bn=False, use_relu=False):
    """Pallas implementation of ConvBlock.forward (NCHW in, NCHW out).

    x_nchw:    (N, Cin, H, W) float32
    weight:    (Cout, Cin, KH, KW) float32  (PyTorch Conv2d layout)
    conv_bias: (Cout,) or None
    bn_params: dict(gamma, beta, mean, var, eps) or None
    """
    assert groups == 1  # TODO(synk): grouped conv not implemented in this kernel
    N, Cin, H, W = x_nchw.shape
    Cout, Cin_w, KH, KW = weight.shape
    assert Cin_w == Cin
    SH = SW = int(stride)
    DH = DW = int(dilation)
    PH = PW = int(padding)
    OH = (H + 2 * PH - DH * (KH - 1) - 1) // SH + 1
    OW = (W + 2 * PW - DW * (KW - 1) - 1) // SW + 1

    # Fold BN (inference form) + conv bias: scale goes into the weights, shift
    # stays as a (Cout, 1) per-channel add in the kernel.
    if use_bn:
        gamma = bn_params["gamma"]
        beta = bn_params["beta"]
        mean = bn_params["mean"]
        var = bn_params["var"]
        eps = bn_params["eps"]
        scale = gamma / jnp.sqrt(var + eps)
        shift = beta - mean * scale
        if conv_bias is not None:
            shift = shift + conv_bias * scale
    else:
        scale = jnp.ones((Cout,), jnp.float32)
        shift = (conv_bias if conv_bias is not None
                 else jnp.zeros((Cout,), jnp.float32))

    # im2col-ordered weights: (Cout, Cin, KH, KW) -> (Cout, KH, KW, Cin)
    # -> (Cout, KH*KW*Cin), with the BN scale pre-multiplied (one-time O(K*C) op).
    w2 = jnp.transpose(weight, (0, 2, 3, 1)).reshape(Cout, KH * KW * Cin)
    w2 = (w2 * scale[:, None]).astype(jnp.float32)
    shift = shift.reshape(Cout, 1).astype(jnp.float32)

    NB = _pick_batch_block(N)
    grid = (N // NB,)

    kernel = functools.partial(
        _conv_bn_relu_kernel,
        NB=NB, KH=KH, KW=KW, OH=OH, OW=OW, SH=SH, SW=SW, DH=DH, DW=DW,
        PH=PH, PW=PW, Cin=Cin, Cout=Cout, use_relu=use_relu,
    )

    out = pl.pallas_call(
        kernel,
        out_shape=jax.ShapeDtypeStruct((N, Cout, OH * OW), jnp.float32),
        grid_spec=pltpu.PrefetchScalarGridSpec(
            num_scalar_prefetch=0,
            grid=grid,
            in_specs=[
                pl.BlockSpec((NB, Cin, H, W), lambda n: (n, 0, 0, 0)),
                pl.BlockSpec((Cout, KH * KW * Cin), lambda n: (0, 0)),
                pl.BlockSpec((Cout, 1), lambda n: (0, 0)),
            ],
            out_specs=pl.BlockSpec((NB, Cout, OH * OW), lambda n: (n, 0, 0)),
        ),
        compiler_params=pltpu.CompilerParams(
            dimension_semantics=("parallel",)),
    )(x_nchw, w2, shift)

    # Free (contiguous) reshape back to NCHW.
    return out.reshape(N, Cout, OH, OW)


def _reference(x_nchw, weight, conv_bias, bn_params, *,
               stride, padding, dilation, use_bn, use_relu):
    y = jax.lax.conv_general_dilated(
        x_nchw, weight,
        window_strides=(stride, stride),
        padding=[(padding, padding), (padding, padding)],
        rhs_dilation=(dilation, dilation),
        dimension_numbers=("NCHW", "OIHW", "NCHW"),
    )
    if conv_bias is not None:
        y = y + conv_bias[None, :, None, None]
    if use_bn:
        g, b, m, v, eps = (bn_params["gamma"], bn_params["beta"],
                           bn_params["mean"], bn_params["var"],
                           bn_params["eps"])
        y = (y - m[None, :, None, None]) / jnp.sqrt(v + eps)[None, :, None, None]
        y = y * g[None, :, None, None] + b[None, :, None, None]
    if use_relu:
        y = jnp.maximum(y, 0.0)
    return y


if __name__ == "__main__":
    # ConvBlock(in_channels=4, out_channels=8, kernel_size=3, stride=1,
    #           padding=1, bias=False, use_bn=True, use_relu=True)
    N, Cin, H, W = 2, 4, 16, 16
    Cout, K = 8, 3
    stride, padding, dilation = 1, 1, 1
    use_bn, use_relu = True, True

    key = jax.random.PRNGKey(0)
    kx, kw, kg, kb = jax.random.split(key, 4)
    x = jax.random.normal(kx, (N, Cin, H, W), jnp.float32)
    weight = jax.random.normal(kw, (Cout, Cin, K, K), jnp.float32) * 0.1
    conv_bias = None  # bias=False
    bn_params = {
        "gamma": 1.0 + 0.1 * jax.random.normal(kg, (Cout,), jnp.float32),
        "beta": 0.1 * jax.random.normal(kb, (Cout,), jnp.float32),
        "mean": jnp.zeros((Cout,), jnp.float32),   # BN in inference form
        "var": jnp.ones((Cout,), jnp.float32),
        "eps": 1e-5,
    }

    out = conv_block_forward(
        x, weight, conv_bias, bn_params,
        stride=stride, padding=padding, dilation=dilation,
        use_bn=use_bn, use_relu=use_relu)
    out = jax.block_until_ready(out)

    ref = _reference(x, weight, conv_bias, bn_params,
                     stride=stride, padding=padding, dilation=dilation,
                     use_bn=use_bn, use_relu=use_relu)
    assert out.shape == (N, Cout, H, W)
    assert jnp.allclose(out, ref, atol=1e-4, rtol=1e-4)
    print("KERNEL_OK")
</pallas_src>

<mosaic_0001>
module attributes {stable_mosaic.version = 11 : i64} {
  func.func @_conv_bn_relu_kernel(%arg0: i32, %arg1: memref<1x4x16x16xf32, #tpu.memory_space<vmem>>, %arg2: memref<8x36xf32, #tpu.memory_space<vmem>>, %arg3: memref<8x1xf32, #tpu.memory_space<vmem>>, %arg4: memref<1x8x256xf32, #tpu.memory_space<vmem>>) attributes {dimension_semantics = [#tpu.dimension_semantics<parallel>], iteration_bounds = array<i64: 2>, scalar_prefetch = 0 : i64, scratch_operands = 0 : i64, tpu.core_type = #tpu.core_type<tc>, window_params = [{transform_indices = @transform_0, window_bounds = array<i64: 1, 4, 16, 16>}, {pipeline_mode = #tpu.pipeline_mode<synchronous>, transform_indices = @transform_1, window_bounds = array<i64: 8, 36>}, {pipeline_mode = #tpu.pipeline_mode<synchronous>, transform_indices = @transform_2, window_bounds = array<i64: 8, 1>}, {transform_indices = @transform_3, window_bounds = array<i64: 1, 8, 256>}]} {
    %c0 = arith.constant 0 : index
    %c0_0 = arith.constant 0 : index
    %c0_1 = arith.constant 0 : index
    %c0_2 = arith.constant 0 : index
    %0 = vector.load %arg1[%c0, %c0_0, %c0_1, %c0_2] : memref<1x4x16x16xf32, #tpu.memory_space<vmem>>, vector<1x4x16x16xf32>
    %cst = arith.constant 0.000000e+00 : f32
    %1 = vector.broadcast %cst : f32 to vector<1x4x16x1xf32>
    %2 = tpu.concatenate %1, %0, %1 in 3 : vector<1x4x16x1xf32>, vector<1x4x16x16xf32>, vector<1x4x16x1xf32> -> vector<1x4x16x18xf32>
    %cst_3 = arith.constant 0.000000e+00 : f32
    %3 = vector.broadcast %cst_3 : f32 to vector<1x4x1x18xf32>
    %4 = tpu.concatenate %3, %2, %3 in 2 : vector<1x4x1x18xf32>, vector<1x4x16x18xf32>, vector<1x4x1x18xf32> -> vector<1x4x18x18xf32>
    %c0_4 = arith.constant 0 : index
    %c0_5 = arith.constant 0 : index
    %5 = vector.load %arg2[%c0_4, %c0_5] : memref<8x36xf32, #tpu.memory_space<vmem>>, vector<8x36xf32>
    %c0_6 = arith.constant 0 : index
    %c0_7 = arith.constant 0 : index
    %6 = vector.load %arg3[%c0_6, %c0_7] : memref<8x1xf32, #tpu.memory_space<vmem>>, vector<8x1xf32>
    %7 = vector.shape_cast %4 : vector<1x4x18x18xf32> to vector<4x18x18xf32>
    %8 = vector.extract_strided_slice %7 {offsets = [0, 0, 0], sizes = [4, 16, 16], strides = [1, 1, 1]} : vector<4x18x18xf32> to vector<4x16x16xf32>
    %9 = vector.shape_cast %8 : vector<4x16x16xf32> to vector<4x256xf32>
    %10 = vector.extract_strided_slice %7 {offsets = [0, 0, 1], sizes = [4, 16, 16], strides = [1, 1, 1]} : vector<4x18x18xf32> to vector<4x16x16xf32>
    %11 = vector.shape_cast %10 : vector<4x16x16xf32> to vector<4x256xf32>
    %12 = vector.extract_strided_slice %7 {offsets = [0, 0, 2], sizes = [4, 16, 16], strides = [1, 1, 1]} : vector<4x18x18xf32> to vector<4x16x16xf32>
    %13 = vector.shape_cast %12 : vector<4x16x16xf32> to vector<4x256xf32>
    %14 = vector.extract_strided_slice %7 {offsets = [0, 1, 0], sizes = [4, 16, 16], strides = [1, 1, 1]} : vector<4x18x18xf32> to vector<4x16x16xf32>
    %15 = vector.shape_cast %14 : vector<4x16x16xf32> to vector<4x256xf32>
    %16 = vector.extract_strided_slice %7 {offsets = [0, 1, 1], sizes = [4, 16, 16], strides = [1, 1, 1]} : vector<4x18x18xf32> to vector<4x16x16xf32>
    %17 = vector.shape_cast %16 : vector<4x16x16xf32> to vector<4x256xf32>
    %18 = vector.extract_strided_slice %7 {offsets = [0, 1, 2], sizes = [4, 16, 16], strides = [1, 1, 1]} : vector<4x18x18xf32> to vector<4x16x16xf32>
    %19 = vector.shape_cast %18 : vector<4x16x16xf32> to vector<4x256xf32>
    %20 = vector.extract_strided_slice %7 {offsets = [0, 2, 0], sizes = [4, 16, 16], strides = [1, 1, 1]} : vector<4x18x18xf32> to vector<4x16x16xf32>
    %21 = vector.shape_cast %20 : vector<4x16x16xf32> to vector<4x256xf32>
    %22 = vector.extract_strided_slice %7 {offsets = [0, 2, 1], sizes = [4, 16, 16], strides = [1, 1, 1]} : vector<4x18x18xf32> to vector<4x16x16xf32>
    %23 = vector.shape_cast %22 : vector<4x16x16xf32> to vector<4x256xf32>
    %24 = vector.extract_strided_slice %7 {offsets = [0, 2, 2], sizes = [4, 16, 16], strides = [1, 1, 1]} : vector<4x18x18xf32> to vector<4x16x16xf32>
    %25 = vector.shape_cast %24 : vector<4x16x16xf32> to vector<4x256xf32>
    %26 = tpu.concatenate %9, %11, %13, %15, %17, %19, %21, %23, %25 in 0 : vector<4x256xf32>, vector<4x256xf32>, vector<4x256xf32>, vector<4x256xf32>, vector<4x256xf32>, vector<4x256xf32>, vector<4x256xf32>, vector<4x256xf32>, vector<4x256xf32> -> vector<36x256xf32>
    %cst_8 = arith.constant dense<0.000000e+00> : vector<8x256xf32>
    %27 = tpu.matmul %5, %26, %cst_8 {dimension_numbers = #tpu.dot_dimension_numbers<[1], [0], [0], [1], [0, 0, 1, 1], [], []>} : vector<8x36xf32>, vector<36x256xf32>, vector<8x256xf32> -> vector<8x256xf32>
    %28 = vector.broadcast %6 : vector<8x1xf32> to vector<8x256xf32>
    %29 = arith.addf %27, %28 : vector<8x256xf32>
    %cst_9 = arith.constant 0.000000e+00 : f32
    %30 = vector.broadcast %cst_9 : f32 to vector<8x256xf32>
    %31 = arith.maximumf %29, %30 : vector<8x256xf32>
    %c0_10 = arith.constant 0 : index
    %c0_11 = arith.constant 0 : index
    %c0_12 = arith.constant 0 : index
    %32 = vector.load %arg4[%c0_10, %c0_11, %c0_12] : memref<1x8x256xf32, #tpu.memory_space<vmem>>, vector<1x8x256xf32>
    %33 = vector.shape_cast %32 : vector<1x8x256xf32> to vector<8x256xf32>
    %34 = vector.shape_cast %31 : vector<8x256xf32> to vector<1x8x256xf32>
    tpu.vector_store %arg4[%c0_10, %c0_11, %c0_12], %34 {strides = array<i32>} : memref<1x8x256xf32, #tpu.memory_space<vmem>>, vector<1x8x256xf32>,
    return
  }
  func.func @transform_0(%arg0: i32) -> (i32, i32, i32, i32) {
    %c0_i32 = arith.constant 0 : i32
    %c0_i32_0 = arith.constant 0 : i32
    %c0_i32_1 = arith.constant 0 : i32
    %c0_i32_2 = arith.constant 0 : i32
    return %arg0, %c0_i32, %c0_i32_0, %c0_i32_1 : i32, i32, i32, i32
  }
  func.func @transform_1(%arg0: i32) -> (i32, i32) {
    %c0_i32 = arith.constant 0 : i32
    %c0_i32_0 = arith.constant 0 : i32
    %c0_i32_1 = arith.constant 0 : i32
    return %c0_i32, %c0_i32_0 : i32, i32
  }
  func.func @transform_2(%arg0: i32) -> (i32, i32) {
    %c0_i32 = arith.constant 0 : i32
    %c0_i32_0 = arith.constant 0 : i32
    %c0_i32_1 = arith.constant 0 : i32
    return %c0_i32, %c0_i32_0 : i32, i32
  }
  func.func @transform_3(%arg0: i32) -> (i32, i32, i32) {
    %c0_i32 = arith.constant 0 : i32
    %c0_i32_0 = arith.constant 0 : i32
    %c0_i32_1 = arith.constant 0 : i32
    return %arg0, %c0_i32, %c0_i32_0 : i32, i32, i32
  }
}

</mosaic_0001>

<bundles_post_ra>
// kernel: tpu_custom_call.1
= control target key start
LH: loop header
LB: loop body
LE: loop exit
PB: predicated region body
PF: predicated region fallthrough
CT: control target
= control target key end

     0   :  { %8 = vsyncpa [#allocation3], 0  ;;  %s4804_s0 = inlined_call_operand.hbm [shape: f32[2,4,16,16], index: 0, kind: input, shape index: {}]   ;;  %s4805_s1 = inlined_call_operand.vmem [shape: f32[8,36], index: 1, kind: input, shape index: {}]   ;;  %s4806_s2 = inlined_call_operand.vmem [shape: f32[8,1], index: 2, kind: input, shape index: {}]   ;;  %s4807_s3 = inlined_call_operand.hbm [shape: f32[2,8,256], index: 3, kind: output, shape index: {}]  }
   0x1   :  { %10 = vsyncpa [#allocation3 + $0x1], 0 }
   0x2   :  { %11 = vsyncpa [#allocation4], 0 }
   0x3   :  { %13 = vsyncpa [#allocation4 + $0x1], 0  ;;  %s3075_s12 = smov 0   ;;  %s3077_s13 = smov 0  }
   0x4   :  { %s3079_s14 = smov 0   ;;  %s3081_s15 = smov 0  }
   0x5 LB: > { %s3096_s16 = sadd.s32 4294967295, %s3035_s15   ;;  %s2569_s17 = sadd.s32 4294967294, %s3035_s15   ;;  %s3035_s15 = sphi %s3081_s15, %s4882_s15   ;;  %s3031_s14 = sphi %s3079_s14, %s4881_s14   ;;  %s3027_s13 = sphi %s3077_s13, %s4880_s13   ;;  %s3023_s12 = sphi %s3075_s12, %s4879_s12  }
   0x6   : > { %s3100_s18 = sadd.s32 1, %s3035_s15   ;;  %s26_s19 = sadd.s32 1, %s3031_s14 }
   0x7   : > { %s23_s20 = ssub.s32 %s3035_s15, %s3100_s18  ;;  %p33_p0 = scmp.ne.s32.totalorder %s3031_s14, %s3027_s13 }
   0x8   : > { %p24_p1 = scmp.eq.s32.totalorder %s23_s20, 0  ;;  %p34_p2 = scmp.eq.s32.totalorder %s3035_s15, 0 }
   0x9   : > { %p39_p3 = scmp.ne.s32.totalorder %s3027_s13, %s3023_s12  ;;  %p40_p4 = scmp.eq.s32.totalorder %s3096_s16, 0 }
   0xa   : > { %s3112_s21 = scalar_select %p24_p1, %s3031_s14, %s26_s19  }
   0xb   : > { %p3114_p5 = por %p34_p2, %p33_p0  ;;  %p3118_p6 = por %p40_p4, %p39_p3 }
   0xc   : > { %p105_p7 = scmp.eq.s32.totalorder %s3096_s16, 1  ;;  %p111_p8 = scmp.eq.s32.totalorder %s2569_s17, 1 }
   0xd   : > { %p2608_p10 = scmp.lt.s32.totalorder %s3035_s15, 2  ;;  %s137_s26 = sand.u32 1, %s3031_s14  }
   0xe   : > { %p3125_p11 = por %p105_p7, %p33_p0  ;;  %p3129_p12 = por %p111_p8, %p39_p3 }
   0xf   : > { %s2586_s27 = sshll.u32 %s3035_s15, 10  ;;  %s2572_s28 = sshll.u32 %s137_s26, 6 }
  0x10   : > { %s4827_s24 = scalar_select %p3125_p11, 1, 0 }
  0x11   : > { %s4828_s25 = scalar_select %p3129_p12, 1, 0 }
  0x12   : > { %s3138_s4 = scalar_lea.hbm %s4804_s0, %s2586_s27  ;;  %s141_s5 = scalar_lea.vmem [#allocation2], %s2572_s28 }
  0x13   : > { %s148_s6 = sshll.u32 %s141_s5, 4  ;;  %p3142_p13 = pnand %p2608_p10, %p3114_p5  ;;  %s3146_s6 = int_to_ptr.vmem [resolvable:$true] %s148_s6 }
  0x14   : > { %s3148_s8 = scalar_lea.sflag [#allocation3], %s137_s26  ;;  %s2939_s9 = scalar_lea.hbm %s3138_s4, 1024 }
  0x15   : > { %p2940_p0 = scmp.ne.s32.totalorder %s3138_s4, %s2939_s9  ;;  %p2941_p1 = pneg %p3142_p13 }
  0x16   : > { %s2944_s17 = scalar_lea.hbm %s4804_s0, 2048  ;;  %p2945_p4 = scmp.lt.u32.totalorder %s3138_s4, %s4804_s0 }
  0x17   : > { %p2942_p2 = pnand %p2941_p1, %p2940_p0  ;;  %p2946_p5 = scmp.lt.u32.totalorder %s2944_s17, %s2939_s9 }
  0x18   : > { %p2948_p8 = scmp.lt.u32.totalorder %s2939_s9, %s3138_s4 }
  0x19   : > { %p2943_p3 = pneg %p2942_p2  ;;  %p2947_p7 = por %p2946_p5, %p2945_p4 }
  0x1b   : > { %p2949_p10 = por %p2948_p8, %p2947_p7 }
  0x1d   : > { %p2950_p9 = pnand %p2949_p10, %p2943_p3 }
  0x1f   : > { %2953 = shalt.err (!%p2950_p9)
}
  0x20   : > { %s2954_s22 = scalar_lea.vmem %s3146_s6, 1024  ;;  %s3037_s26 = smov [#allocation2]  }
  0x21   : > { %p2955_p0 = scmp.ne.s32.totalorder %s3146_s6, %s2954_s22  ;;  %s2959_s27 = sshll.u32 %s3037_s26, 4  ;;  %s2960_s27 = int_to_ptr.vmem [resolvable:$false] %s2959_s27 }
  0x22   : > { %s2961_s28 = scalar_lea.vmem %s2960_s27, 2048  ;;  %p2962_p11 = scmp.lt.s32.totalorder %s3146_s6, %s2960_s27 }
  0x23   : > { %p2957_p2 = pnand %p2955_p0, %p2941_p1  ;;  %p2963_p4 = scmp.lt.s32.totalorder %s2961_s28, %s2954_s22 }
  0x25   : > { %p2958_p12 = pneg %p2957_p2  ;;  %p2964_p5 = por %p2963_p4, %p2962_p11 }
  0x27   : > { %p2965_p7 = pnand %p2964_p5, %p2958_p12 }
  0x29   : > { %2968 = shalt.err (!%p2965_p7)
}
  0x2a   : > { %s3038_s29 = smov 128   ;;  %s3039_s30 = smov 8  }
  0x2b   : > { %2603 = dma.hbm_to_vmem [thread:$0]  (!%p3142_p13), %s3138_s4, 1024, %s3146_s6, %s3148_s8, %s3038_s29, %s3038_s29, %s3039_s30  }
  0x2c   : > { %p2575_p9 = scmp.ge.s32.totalorder %s3035_s15, 1  ;;  %p156_p1 = scmp.lt.s32.totalorder %s3035_s15, 3 }
  0x2e   : > { %p157_p3 = pnand %p2575_p9, %p156_p1 }
  0x30   : > { %160 = sbr.rel (%p157_p3) target bundleno = 818 (0x332), region = 32 }
  0x37   : > { %s3179_s5 = sand.u32 1, %s3027_s13  }
  0x38   : > { %s2576_s9 = sshll.u32 %s3179_s5, 6  ;;  %s163_s10 = scalar_lea.sflag [#allocation3], %s3179_s5 }
  0x39   : > { %s166_s11 = scalar_lea.vmem [#allocation2], %s2576_s9 }
  0x3a   : > { %3014 = dma.done.wait (%p3118_p6), %s163_s10, 1024  }
  0x3b   : > { %3016 = vsyncadd (%p3118_p6), %s163_s10, 4294966272  ;;  %v191_v0 = vld [vmem:[%s166_s11 + $0x10] sm:$0xff]  ;;  %v189_v1 = vld [vmem:[%s166_s11] sm:$0xff]  ;;  %s3040_s4 = smov 1   ;;  %v4809_v8 = vmov 0.0   ;;  %vm229_vm0 = vcmask 7168   ;;  %v295_v38 = vlaneseq }
  0x3c   : > { %209 = vrot.lane.b32.xlu1 %v191_v0, %s3040_s4  ;;  %205 = vrot.lane.b32.xlu0 %v189_v1, %s3040_s4  ;;  %v192_v2 = vld [vmem:[%s166_s11 + $0x18] sm:$0xff]  ;;  %v190_v3 = vld [vmem:[%s166_s11 + $0x8] sm:$0xff]  ;;  %vm238_vm1 = vcmask 138240   ;;  %vm255_vm2 = vcmask 1040384   ;;  %s3042_s23 = smov 127   ;;  %vm971_vm3 = vcmask 1046528  }
  0x3d   : > { %v194_v4 = vld [vmem:[%s166_s11 + $0x28] sm:$0xff]  ;;  %v193_v5 = vld [vmem:[%s166_s11 + $0x20] sm:$0xff]  ;;  %v196_v6 = vld [vmem:[%s166_s11 + $0x38] sm:$0xff]  ;;  %2473 = vmatprep.mubr.f32.mxu0 %v4809_v8  ;;  %v3043_v36 = vmov 1983009808   ;;  %v3247_v61 = vshrl.u32 %v295_v38, 7 }
  0x3e   : > { %v195_v7 = vld [vmem:[%s166_s11 + $0x30] sm:$0xff]  ;;  %v293_v37 = vunpack.c.l.s4 %v3043_v36  ;;  %s3044_s6 = smov 126   ;;  %vm1666_vm4 = vcmask 1045504   ;;  %s3046_s7 = smov 32   ;;  %vm482_vm5 = vcmask 130048   ;;  %vm484_vm6 = vcmask 261120  }
  0x3f   : > { %s3047_s8 = smov 64   ;;  %s3048_s17 = smov 96   ;;  %vm486_vm7 = vcmask 392192   ;;  %vm488_vm8 = vcmask 523264   ;;  %vm490_vm9 = vcmask 654336   ;;  %vm492_vm10 = vcmask 785408  }
  0x40   : > { %211 = vrot.lane.b32.xlu1 %v192_v2, %s3040_s4  ;;  %207 = vrot.lane.b32.xlu0 %v190_v3, %s3040_s4  ;;  %v294_v56 = vunpack.c.0.s8 %v293_v37  ;;  %s3049_s19 = smov 16   ;;  %s3050_s20 = smov 48   ;;  %vm494_vm11 = vcmask 916480   ;;  %vm2385_vm12 = vcmask 1043456   ;;  %vm2399_vm13 = vcmask 293888  }
  0x41   : > { %s3051_s22 = smov 80   ;;  %s3052_s26 = smov 112  }
  0x42   : > { %s2577_s9 = sshll.u32 %s3179_s5, 4  ;;  %s2587_s10 = sshll.u32 %s3096_s16, 8 }
  0x43   : > { %s188_s11 = scalar_lea.vmem [#allocation5], %s2577_s9  ;;  %p4876_p11 = scmp.ne.s32.totalorder %s4827_s24, 0 }
  0x44   : > { %215 = vrot.lane.b32.xlu1 %v194_v4, %s3040_s4  ;;  %213 = vrot.lane.b32.xlu0 %v193_v5, %s3040_s4  ;;  %s3054_s16 = smov [#allocation5]  }
  0x48   : > { %219 = vrot.lane.b32.xlu1 %v196_v6, %s3040_s4  ;;  %217 = vrot.lane.b32.xlu0 %v195_v7, %s3040_s4  ;;  %s2499_s4 = sshll.u32 %s188_s11, 4  ;;  %s4762_s4 = int_to_ptr.vmem [resolvable:$true] %s2499_s4 }
  0xae   : > { %v210_v9 = vpop.permute.xlu1 %209  ;;  %v206_v10 = vpop.permute.xlu0 %205 }
  0xaf   : > { %v232_v11 = vsel %vm229_vm0, 0.0, %v210_v9  ;;  %v230_v12 = vsel %vm229_vm0, 0.0, %v206_v10 }
  0xb0   : > { %v3191_v13 = vsel %vm238_vm1, %v232_v11, 0.0  ;;  %v239_v14 = vsel %vm238_vm1, %v230_v12, 0.0 }
  0xb1   : > { %v259_v21 = vrot.slane %v3191_v13, 7  ;;  %v256_v22 = vrot.slane %v239_v14, 7  ;;  %v3288_v13 = vsub.s32 %v294_v56, %v3247_v61 }
  0xb2   : > { %v212_v15 = vpop.permute.xlu1 %211  ;;  %v208_v16 = vpop.permute.xlu0 %207 }
  0xb3   : > { %v233_v17 = vsel %vm229_vm0, 0.0, %v212_v15  ;;  %v231_v18 = vsel %vm229_vm0, 0.0, %v208_v16  ;;  %v3250_v62 = vsel %vm255_vm2, 0.0, %v256_v22  ;;  %v3268_v4 = vsel %vm255_vm2, 0.0, %v259_v21 }
  0xb4   : > { %v242_v19 = vsel %vm238_vm1, %v233_v17, 0.0  ;;  %v240_v20 = vsel %vm238_vm1, %v231_v18, 0.0  ;;  %v972_v12 = vrot.slane %v3250_v62, 1  ;;  %v977_v16 = vrot.slane %v3268_v4, 1 }
  0xb5   : > { %v260_v23 = vrot.slane %v242_v19, 7  ;;  %v257_v24 = vrot.slane %v240_v20, 7 }
  0xb6   : > { %v216_v25 = vpop.permute.xlu1 %215  ;;  %v214_v26 = vpop.permute.xlu0 %213 }
  0xb7   : > { %v3200_v27 = vsel %vm255_vm2, %v259_v21, %v260_v23  ;;  %v3203_v28 = vsel %vm255_vm2, %v256_v22, %v257_v24  ;;  %v3210_v29 = vsel %vm255_vm2, %v257_v24, 0.0  ;;  %v235_v30 = vsel %vm229_vm0, 0.0, %v216_v25 }
  0xb8   : > { %513 = vrot.lane.b32.xlu1 %v3200_v27, %s3042_s23  ;;  %509 = vrot.lane.b32.xlu0 %v3203_v28, %s3042_s23  ;;  %v234_v31 = vsel %vm229_vm0, 0.0, %v214_v26  ;;  %v244_v32 = vsel %vm238_vm1, %v235_v30, 0.0  ;;  %v3219_v43 = vsel %vm255_vm2, %v260_v23, 0.0  ;;  %v975_v44 = vrot.slane %v3210_v29, 1 }
  0xb9   : > { %v243_v33 = vsel %vm238_vm1, %v234_v31, 0.0  ;;  %v263_v39 = vrot.slane %v244_v32, 7  ;;  %v973_v50 = vrot.slane %v3203_v28, 1  ;;  %v980_v54 = vrot.slane %v3219_v43, 1 }
  0xba   : > { %v220_v34 = vpop.permute.xlu1 %219  ;;  %v218_v35 = vpop.permute.xlu0 %217  ;;  %v262_v40 = vrot.slane %v243_v33, 7  ;;  %v978_v57 = vrot.slane %v3200_v27, 1 }
  0xbb   : > { %v237_v41 = vsel %vm229_vm0, 0.0, %v220_v34  ;;  %v236_v42 = vsel %vm229_vm0, 0.0, %v218_v35  ;;  %v3225_v47 = vsel %vm255_vm2, %v263_v39, 0.0  ;;  %v3255_v63 = vsel %vm971_vm3, %v973_v50, %v975_v44 }
  0xbc   : > { %v246_v45 = vsel %vm238_vm1, %v237_v41, 0.0  ;;  %v245_v46 = vsel %vm238_vm1, %v236_v42, 0.0  ;;  %v3228_v48 = vsel %vm255_vm2, %v262_v40, %v263_v39  ;;  %v985_v51 = vrot.slane %v3225_v47, 1 }
  0xbd   : > { %v266_v49 = vrot.slane %v246_v45, 7  ;;  %v265_v52 = vrot.slane %v245_v46, 7  ;;  %517 = vrot.lane.b32.xlu0 %v3228_v48, %s3042_s23  ;;  %v983_v53 = vrot.slane %v3228_v48, 1  ;;  %v3241_v58 = vsel %vm255_vm2, 0.0, %v262_v40 }
  0xbe   : > { %v3271_v5 = vsel %vm971_vm3, %v978_v57, %v980_v54  ;;  %v982_v7 = vrot.slane %v3241_v58, 1  ;;  %v3296_v15 = vsel %vm971_vm3, %v972_v12, %v973_v50  ;;  %v3313_v22 = vsel %vm971_vm3, %v977_v16, %v978_v57 }
  0xbf   : > { %v3237_v55 = vsel %vm255_vm2, %v266_v49, 0.0  ;;  %v3245_v60 = vsel %vm255_vm2, %v265_v52, %v266_v49  ;;  %v3258_v0 = vsel %vm971_vm3, %v983_v53, %v985_v51  ;;  %v3278_v9 = vsel %vm255_vm2, 0.0, %v265_v52 }
  0xc0   : > { %v990_v59 = vrot.slane %v3237_v55, 1  ;;  %521 = vrot.lane.b32.xlu1 %v3245_v60, %s3042_s23  ;;  %v988_v1 = vrot.slane %v3245_v60, 1  ;;  %v1068_v2 = vcombine.low %v3255_v63, %v3258_v0  ;;  %v1069_v3 = vcombine.high %v3255_v63, %v3258_v0 }
  0xc1   : > { %507 = vrot.lane.b32.xlu0 %v3250_v62, %s3042_s23  ;;  %v3291_v14 = vsel %vm971_vm3, %v982_v7, %v983_v53  ;;  %v987_v20 = vrot.slane %v3278_v9, 1  ;;  %v358_v34 = vcombine.low %v3203_v28, %v3228_v48  ;;  %v374_v37 = vcombine.low %v3200_v27, %v3245_v60 }
  0xc2   : > { %v3274_v6 = vsel %vm971_vm3, %v988_v1, %v990_v59  ;;  %v1000_v18 = vcombine.low %v3296_v15, %v3291_v14  ;;  %v1001_v19 = vcombine.high %v3296_v15, %v3291_v14  ;;  %v3310_v21 = vrot.slane %v1068_v2, %v3288_v13 }
  0xc3   : > { %v1084_v10 = vcombine.low %v3271_v5, %v3274_v6  ;;  %v1085_v11 = vcombine.high %v3271_v5, %v3274_v6  ;;  %v3316_v23 = vsel %vm971_vm3, %v987_v20, %v988_v1  ;;  %v3338_v33 = vrot.slane %v1069_v3, %v3288_v13 }
  0xc4   : > { %511 = vrot.lane.b32.xlu1 %v3268_v4, %s3042_s23  ;;  %v1016_v24 = vcombine.low %v3313_v22, %v3316_v23  ;;  %v1017_v25 = vcombine.high %v3313_v22, %v3316_v23  ;;  %v3330_v31 = vrot.slane %v1000_v18, %v3288_v13  ;;  %v291_v39 = vcombine.high %v3250_v62, %v3241_v58 }
  0xc5   : > { %515 = vrot.lane.b32.xlu0 %v3241_v58, %s3042_s23  ;;  %v3300_v17 = vrot.slane %v1084_v10, %v3288_v13  ;;  %v3325_v26 = vrot.slane %v1085_v11, %v3288_v13  ;;  %v307_v40 = vcombine.high %v3268_v4, %v3278_v9  ;;  %v3358_v41 = vrot.slane %v1001_v19, %v3288_v13 }
  0xc6   : > { %v3333_v32 = vrot.slane %v1016_v24, %v3288_v13  ;;  %v3345_v35 = vrot.slane %v1017_v25, %v3288_v13  ;;  %v3361_v42 = vrot.slane %v358_v34, %v3288_v13  ;;  %v3364_v44 = vrot.slane %v374_v37, %v3288_v13 }
  0xc7   : > { %v1101_v30 = vcombine.high %v3310_v21, %v3300_v17  ;;  %v1116_v38 = vcombine.low %v3338_v33, %v3325_v26  ;;  %v290_v45 = vcombine.low %v3250_v62, %v3241_v58  ;;  %v3371_v46 = vrot.slane %v291_v39, %v3288_v13 }
  0xc8   : > { %519 = vrot.lane.b32.xlu1 %v3278_v9, %s3042_s23  ;;  %v1033_v36 = vcombine.high %v3330_v31, %v3333_v32  ;;  %v3374_v49 = vrot.slane %v307_v40, %v3288_v13  ;;  %v306_v50 = vcombine.low %v3268_v4, %v3278_v9  ;;  %v391_v51 = vcombine.high %v3361_v42, %v3364_v44 }
  0xc9   : > { %739 = vrot.lane.b32.xlu0 %v3203_v28, %s3044_s6  ;;  %v3383_v52 = vrot.slane %v290_v45, %v3288_v13  ;;  %v359_v59 = vcombine.high %v3203_v28, %v3228_v48  ;;  %v375_v1 = vcombine.high %v3200_v27, %v3245_v60  ;;  %v1670_v25 = vrot.slane %v3210_v29, 2 }
  0xca   : > { %v338_v56 = vcombine.low %v3371_v46, %v3374_v49  ;;  %v3392_v57 = vrot.slane %v306_v50, %v3288_v13  ;;  %v1668_v34 = vrot.slane %v3203_v28, 2  ;;  %v1675_v37 = vrot.slane %v3219_v43, 2 }
  0xcb   : > { %v3405_v7 = vrot.slane %v359_v59, %v3288_v13  ;;  %v3408_v10 = vrot.slane %v375_v1, %v3288_v13  ;;  %v1673_v39 = vrot.slane %v3200_v27, 2  ;;  %v1680_v40 = vrot.slane %v3225_v47, 2 }
  0xcc   : > { %743 = vrot.lane.b32.xlu1 %v3200_v27, %s3044_s6  ;;  %v323_v3 = vcombine.high %v3383_v52, %v3392_v57  ;;  %v3440_v45 = vsel %vm1666_vm4, %v1668_v34, %v1670_v25  ;;  %v1678_v29 = vrot.slane %v3228_v48, 2  ;;  %v1685_v28 = vrot.slane %v3237_v55, 2 }
  0xcd   : > { %747 = vrot.lane.b32.xlu0 %v3228_v48, %s3044_s6  ;;  %v3449_v50 = vsel %vm1666_vm4, %v1673_v39, %v1675_v37  ;;  %v1683_v27 = vrot.slane %v3245_v60, 2  ;;  %v1667_v48 = vrot.slane %v3250_v62, 2  ;;  %v1672_v59 = vrot.slane %v3268_v4, 2 }
  0xce   : > { %v3453_v43 = vsel %vm1666_vm4, %v1678_v29, %v1680_v40  ;;  %v1682_v25 = vrot.slane %v3278_v9, 2 }
  0xcf   : > { %v3460_v47 = vsel %vm1666_vm4, %v1683_v27, %v1685_v28  ;;  %v3472_v55 = vsel %vm1666_vm4, %v1667_v48, %v1668_v34  ;;  %v3481_v1 = vsel %vm1666_vm4, %v1672_v59, %v1673_v39 }
  0xd0   : > { %751 = vrot.lane.b32.xlu1 %v3245_v60, %s3044_s6  ;;  %v1677_v60 = vrot.slane %v3241_v58, 2 }
  0xd1   : > { %737 = vrot.lane.b32.xlu0 %v3250_v62, %s3044_s6 }
  0xd2   : > { %v3485_v62 = vsel %vm1666_vm4, %v1677_v60, %v1678_v29 }
  0xd4   : > { %741 = vrot.lane.b32.xlu1 %v3268_v4, %s3044_s6 }
  0xd5   : > { %745 = vrot.lane.b32.xlu0 %v3241_v58, %s3044_s6  ;;  %v3492_v58 = vsel %vm1666_vm4, %v1682_v25, %v1683_v27 }
  0xd8   : > { %749 = vrot.lane.b32.xlu1 %v3278_v9, %s3044_s6 }
  0xd9   : > { %1438 = vrot.lane.b32.xlu0 %v3255_v63, %s3044_s6 }
  0xdc   : > { %1442 = vrot.lane.b32.xlu1 %v3271_v5, %s3044_s6 }
  0xdd   : > { %1446 = vrot.lane.b32.xlu0 %v3258_v0, %s3044_s6 }
  0xe0   : > { %1450 = vrot.lane.b32.xlu1 %v3274_v6, %s3044_s6 }
  0xe1   : > { %1903 = vrot.lane.b32.xlu0 %v3440_v45, %s3042_s23 }
  0xe4   : > { %1907 = vrot.lane.b32.xlu1 %v3449_v50, %s3042_s23 }
  0xe5   : > { %1911 = vrot.lane.b32.xlu0 %v3453_v43, %s3042_s23 }
  0xe8   : > { %1915 = vrot.lane.b32.xlu1 %v3460_v47, %s3042_s23 }
  0xe9   : > { %1436 = vrot.lane.b32.xlu0 %v3296_v15, %s3044_s6 }
  0xec   : > { %1440 = vrot.lane.b32.xlu1 %v3313_v22, %s3044_s6 }
  0xed   : > { %1444 = vrot.lane.b32.xlu0 %v3291_v14, %s3044_s6 }
  0xf0   : > { %1448 = vrot.lane.b32.xlu1 %v3316_v23, %s3044_s6 }
  0xf1   : > { %1901 = vrot.lane.b32.xlu0 %v3472_v55, %s3042_s23 }
  0xf4   : > { %1905 = vrot.lane.b32.xlu1 %v3481_v1, %s3042_s23 }
  0xf5   : > { %1909 = vrot.lane.b32.xlu0 %v3485_v62, %s3042_s23 }
  0xf8   : > { %1913 = vrot.lane.b32.xlu1 %v3492_v58, %s3042_s23 }
  0xf9   : > { %1208 = vrot.lane.b32.xlu0 %v3255_v63, %s3042_s23 }
  0xfc   : > { %1212 = vrot.lane.b32.xlu1 %v3271_v5, %s3042_s23  ;;  %v3045_v5 = vmov 1934713408  }
  0xfd   : > { %1216 = vrot.lane.b32.xlu0 %v3258_v0, %s3042_s23 }
 0x100   : > { %1220 = vrot.lane.b32.xlu1 %v3274_v6, %s3042_s23  ;;  %v325_v6 = vunpack.c.l.s4 %v3045_v5 }
 0x101   : > { %1206 = vrot.lane.b32.xlu0 %v3296_v15, %s3042_s23 }
 0x104   : > { %1210 = vrot.lane.b32.xlu1 %v3313_v22, %s3042_s23 }
 0x105   : > { %1214 = vrot.lane.b32.xlu0 %v3291_v14, %s3042_s23 }
 0x108   : > { %1218 = vrot.lane.b32.xlu1 %v3316_v23, %s3042_s23  ;;  %v326_v23 = vunpack.c.0.s8 %v325_v6 }
 0x109   : > { %2133 = vrot.lane.b32.xlu0 %v3440_v45, %s3044_s6 }
 0x10a   : > { %v3537_v28 = vsub.s32 %v326_v23, %v3247_v61 }
 0x10c   : > { %2137 = vrot.lane.b32.xlu1 %v3449_v50, %s3044_s6  ;;  %v3546_v60 = vrot.slane %v1101_v30, %v3537_v28 }
 0x10d   : > { %2141 = vrot.lane.b32.xlu0 %v3453_v43, %s3044_s6 }
 0x110   : > { %2145 = vrot.lane.b32.xlu1 %v3460_v47, %s3044_s6 }
 0x111   : > { %2131 = vrot.lane.b32.xlu0 %v3472_v55, %s3044_s6 }
 0x114   : > { %2135 = vrot.lane.b32.xlu1 %v3481_v1, %s3044_s6 }
 0x115   : > { %2139 = vrot.lane.b32.xlu0 %v3485_v62, %s3044_s6 }
 0x118   : > { %2143 = vrot.lane.b32.xlu1 %v3492_v58, %s3044_s6 }
 0x12a   : > { %v510_v63 = vpop.permute.xlu0 %509  ;;  %v514_v0 = vpop.permute.xlu1 %513 }
 0x12f   : > { %v518_v4 = vpop.permute.xlu0 %517 }
 0x130   : > { %v599_v9 = vcombine.low %v510_v63, %v518_v4  ;;  %v600_v24 = vcombine.high %v510_v63, %v518_v4 }
 0x132   : > { %v522_v14 = vpop.permute.xlu1 %521  ;;  %v3529_v34 = vrot.slane %v599_v9, %v3288_v13  ;;  %v3574_v63 = vrot.slane %v600_v24, %v3288_v13 }
 0x133   : > { %v615_v15 = vcombine.low %v514_v0, %v522_v14  ;;  %v508_v22 = vpop.permute.xlu0 %507 }
 0x135   : > { %v3532_v37 = vrot.slane %v615_v15, %v3288_v13  ;;  %v616_v15 = vcombine.high %v514_v0, %v522_v14 }
 0x136   : > { %v512_v39 = vpop.permute.xlu1 %511 }
 0x137   : > { %v632_v40 = vcombine.high %v3529_v34, %v3532_v37  ;;  %v516_v29 = vpop.permute.xlu0 %515 }
 0x138   : > { %v531_v27 = vcombine.low %v508_v22, %v516_v29  ;;  %v532_v19 = vcombine.high %v508_v22, %v516_v29 }
 0x139   : > { %v3540_v48 = vrot.slane %v632_v40, %v3537_v28 }
 0x13a   : > { %v520_v59 = vpop.permute.xlu1 %519  ;;  %v3551_v9 = vrot.slane %v531_v27, %v3288_v13  ;;  %v3566_v27 = vrot.slane %v1033_v36, %v3537_v28 }
 0x13b   : > { %v547_v25 = vcombine.low %v512_v39, %v520_v59  ;;  %v740_v5 = vpop.permute.xlu0 %739  ;;  %v2658_v6 = vpack.i.bf16 %v3546_v60, %v3540_v48 }
 0x13d   : > { %v3554_v61 = vrot.slane %v547_v25, %v3288_v13  ;;  %2659 = vrot.lane.b32.xlu0 %v2658_v6, %s3046_s7  ;;  %v3569_v25 = vrot.slane %v616_v15, %v3288_v13  ;;  %v548_v15 = vcombine.high %v512_v39, %v520_v59 }
 0x13e   : > { %v744_v23 = vpop.permute.xlu1 %743 }
 0x13f   : > { %v564_v30 = vcombine.high %v3551_v9, %v3554_v61  ;;  %v748_v40 = vpop.permute.xlu0 %747  ;;  %v647_v36 = vcombine.low %v3574_v63, %v3569_v25 }
 0x140   : > { %v829_v20 = vcombine.low %v740_v5, %v748_v40 }
 0x141   : > { %v3560_v8 = vrot.slane %v564_v30, %v3537_v28  ;;  %v3598_v59 = vrot.slane %v647_v36, %v3537_v28 }
 0x142   : > { %v752_v0 = vpop.permute.xlu1 %751  ;;  %v3577_v4 = vrot.slane %v829_v20, %v3288_v13  ;;  %v3591_v20 = vrot.slane %v391_v51, %v3537_v28  ;;  %v546_v51 = vrot.slane %v532_v19, %v3288_v13 }
 0x143   : > { %v845_v14 = vcombine.low %v744_v23, %v752_v0  ;;  %v738_v6 = vpop.permute.xlu0 %737  ;;  %v2663_v16 = vpack.i.bf16 %v3566_v27, %v3560_v8  ;;  %v846_v54 = vcombine.high %v744_v23, %v752_v0 }
 0x145   : > { %v3580_v30 = vrot.slane %v845_v14, %v3288_v13  ;;  %2664 = vrot.lane.b32.xlu0 %v2663_v16, %s3046_s7  ;;  %v562_v14 = vrot.slane %v548_v15, %v3288_v13  ;;  %v860_v15 = vrot.slane %v846_v54, %v3288_v13 }
 0x146   : > { %v742_v12 = vpop.permute.xlu1 %741 }
 0x147   : > { %v862_v2 = vcombine.high %v3577_v4, %v3580_v30  ;;  %v746_v11 = vpop.permute.xlu0 %745  ;;  %v579_v19 = vcombine.low %v546_v51, %v562_v14 }
 0x148   : > { %v761_v24 = vcombine.low %v738_v6, %v746_v11  ;;  %v762_v18 = vcombine.high %v738_v6, %v746_v11  ;;  %v830_v6 = vcombine.high %v740_v5, %v748_v40  ;;  %v580_v5 = vcombine.high %v546_v51, %v562_v14 }
 0x149   : > { %v3594_v16 = vrot.slane %v862_v2, %v3537_v28  ;;  %v3609_v2 = vrot.slane %v1116_v38, %v3537_v28 }
 0x14a   : > { %v750_v39 = vpop.permute.xlu1 %749  ;;  %v3612_v36 = vrot.slane %v761_v24, %v3288_v13  ;;  %v776_v23 = vrot.slane %v762_v18, %v3288_v13  ;;  %v3633_v18 = vrot.slane %v338_v56, %v3537_v28  ;;  %v844_v14 = vrot.slane %v830_v6, %v3288_v13 }
 0x14b   : > { %v777_v53 = vcombine.low %v742_v12, %v750_v39  ;;  %v778_v22 = vcombine.high %v742_v12, %v750_v39  ;;  %v3600_v29 = vpop.permute.xlu0 %1438  ;;  %v2668_v11 = vpack.i.bf16 %v3594_v16, %v3591_v20  ;;  %v3652_v56 = vrot.slane %v580_v5, %v3537_v28 }
 0x14c   : > { %4830 = vst [vmem:[#allocation8_spill] sm:$0xff] %v3600_v29  ;;  %v3655_v6 = vrot.slane %v579_v19, %v3537_v28  ;;  %v4836_v19 = vcombine.low %v3358_v41, %v3345_v35 }
 0x14d   : > { %v3616_v12 = vrot.slane %v777_v53, %v3288_v13  ;;  %v792_v0 = vrot.slane %v778_v22, %v3288_v13  ;;  %2669 = vrot.lane.b32.xlu1 %v2668_v11, %s3046_s7  ;;  %v2673_v53 = vpack.i.bf16 %v3609_v2, %v3598_v59  ;;  %v3644_v22 = vrot.slane %v323_v3, %v3537_v28 }
 0x14e   : > { %v3620_v40 = vpop.permute.xlu1 %1442  ;;  %v3675_v5 = vrot.slane %v4836_v19, %v3537_v28 }
 0x14f   : > { %4831 = vst [vmem:[#allocation9_spill] sm:$0xff] %v3620_v40  ;;  %v794_v38 = vcombine.high %v3612_v36, %v3616_v12  ;;  %v809_v24 = vcombine.low %v776_v23, %v792_v0  ;;  %v3625_v39 = vpop.permute.xlu0 %1446  ;;  %v793_v19 = vcombine.low %v3612_v36, %v3616_v12  ;;  %v4842_v36 = vcombine.high %v3371_v46, %v3374_v49 }
 0x150   : > { %4832 = vst [vmem:[#allocation10_spill] sm:$0xff] %v3625_v39  ;;  %v4847_v46 = vmov 0.0  }
 0x151   : > { %2674 = vrot.lane.b32.xlu1 %v2673_v53, %s3047_s8  ;;  %v3638_v54 = vrot.slane %v809_v24, %v3537_v28  ;;  %v3647_v11 = vrot.slane %v794_v38, %v3537_v28  ;;  %v877_v53 = vcombine.low %v844_v14, %v860_v15  ;;  %v878_v24 = vcombine.high %v844_v14, %v860_v15 }
 0x152   : > { %v3649_v51 = vpop.permute.xlu1 %1450  ;;  %v4835_v38 = vcombine.high %v3358_v41, %v3345_v35  ;;  %v631_v15 = vcombine.low %v3529_v34, %v3532_v37  ;;  %v648_v14 = vcombine.high %v3574_v63, %v3569_v25  ;;  %v2683_v35 = vpack.i.bf16 %v3675_v5, %v3655_v6 }
 0x153   : > { %4833 = vst [vmem:[#allocation11_spill] sm:$0xff] %v3638_v54  ;;  %4834 = vst [vmem:[#allocation12_spill] sm:$0xff] %v3647_v11  ;;  %v3657_v29 = vpop.permute.xlu0 %1903  ;;  %v2698_v39 = vpack.i.bf16 %v3638_v54, %v3633_v18  ;;  %v2678_v3 = vpack.i.bf16 %v3647_v11, %v3644_v22  ;;  %v3692_v41 = vrot.slane %v878_v24, %v3537_v28 }
 0x154   : > { %v3667_v40 = vrot.slane %v4835_v38, %v3537_v28  ;;  %v563_v38 = vcombine.low %v3551_v9, %v3554_v61  ;;  %v3695_v34 = vrot.slane %v877_v53, %v3537_v28  ;;  %v4837_v37 = vcombine.high %v3405_v7, %v3408_v10 }
 0x155   : > { %2699 = vrot.lane.b32.xlu1 %v2698_v39, %s3047_s8  ;;  %2679 = vrot.lane.b32.xlu0 %v2678_v3, %s3046_s7  ;;  %v810_v3 = vcombine.high %v776_v23, %v792_v0  ;;  %v4838_v61 = vcombine.low %v3405_v7, %v3408_v10  ;;  %v861_v63 = vcombine.low %v3577_v4, %v3580_v30 }
 0x156   : > { %v3683_v54 = vpop.permute.xlu1 %1907  ;;  %v2703_v39 = vpack.i.bf16 %v3667_v40, %v3652_v56  ;;  %v3703_v9 = vrot.slane %v4837_v37, %v3537_v28  ;;  %v3716_v0 = vrot.slane %v648_v14, %v3537_v28  ;;  %v3719_v53 = vrot.slane %v563_v38, %v3537_v28 }
 0x157   : > { %v3687_v11 = vpop.permute.xlu0 %1911  ;;  %v3709_v25 = vrot.slane %v4838_v61, %v3537_v28  ;;  %v3722_v24 = vrot.slane %v631_v15, %v3537_v28  ;;  %v3733_v30 = vrot.slane %v810_v3, %v3537_v28  ;;  %v4841_v14 = vcombine.high %v3338_v33, %v3325_v26 }
 0x158   : > { %4839 = vst [vmem:[#allocation13_spill] sm:$0xff] %v3719_v53  ;;  %v2708_v10 = vpack.i.bf16 %v3692_v41, %v3703_v9  ;;  %v3747_v12 = vrot.slane %v4842_v36, %v3537_v28  ;;  %v4843_v38 = vcombine.low %v3330_v31, %v3333_v32  ;;  %v4845_v26 = vcombine.low %v3310_v21, %v3300_v17 }
 0x159   : > { %2704 = vrot.lane.b32.xlu1 %v2703_v39, %s3048_s17  ;;  %2684 = vrot.lane.b32.xlu0 %v2683_v35, %s3047_s8  ;;  %4840 = vst [vmem:[#allocation14_spill] sm:$0xff] %v3722_v24  ;;  %v2688_v4 = vpack.i.bf16 %v3695_v34, %v3709_v25  ;;  %v3739_v15 = vrot.slane %v4841_v14, %v3537_v28 }
 0x15a   : > { %v3713_v23 = vpop.permute.xlu1 %1915  ;;  %v3753_v39 = vrot.slane %v4843_v38, %v3537_v28  ;;  %v3759_v33 = vrot.slane %v4845_v26, %v3537_v28  ;;  %v663_v49 = vcombine.high %v3722_v24, %v4847_v46  ;;  %v2713_v31 = vpack.i.bf16 %v3733_v30, %v3747_v12 }
 0x15b   : > { %v3726_v7 = vpop.permute.xlu0 %1436  ;;  %v2693_v35 = vpack.i.bf16 %v3739_v15, %v3716_v0  ;;  %v595_v32 = vcombine.high %v3719_v53, %v4847_v46  ;;  %v3774_v17 = vrot.slane %v861_v63, %v3537_v28  ;;  %v3777_v21 = vrot.slane %v793_v19, %v3537_v28  ;;  %v4858_v53 = vld [vmem:[#allocation11_spill] sm:$0xff] }
 0x15c   : > { %4844 = vst [vmem:[#allocation15_spill] sm:$0xff] %v3753_v39  ;;  %4846 = vst [vmem:[#allocation16_spill] sm:$0xff] %v3759_v33  ;;  %v4850_v61 = vcombine.low %v3361_v42, %v3364_v44  ;;  %v1132_v63 = vcombine.high %v3759_v33, %v4847_v46  ;;  %v4852_v19 = vcombine.low %v3383_v52, %v3392_v57 }
 0x15d   : > { %2709 = vrot.lane.b32.xlu1 %v2708_v10, %s3048_s17  ;;  %2689 = vrot.lane.b32.xlu0 %v2688_v4, %s3047_s8  ;;  %4848 = vst [vmem:[#allocation17_spill] sm:$0xff] %v3774_v17  ;;  %4849 = vst [vmem:[#allocation18_spill] sm:$0xff] %v3777_v21  ;;  %v1064_v4 = vcombine.high %v3753_v39, %v4847_v46  ;;  %v893_v26 = vcombine.high %v3774_v17, %v4847_v46 }
 0x15e   : > { %v3761_v3 = vpop.permute.xlu1 %1440  ;;  %v3783_v10 = vrot.slane %v4850_v61, %v3537_v28  ;;  %v3795_v14 = vrot.slane %v4852_v19, %v3537_v28  ;;  %v2718_v38 = vpack.i.bf16 %v1132_v63, %v663_v49  ;;  %v1764_v52 = vcombine.high %v3440_v45, %v3453_v43 }
 0x15f   : > { %v3767_v37 = vpop.permute.xlu0 %1444  ;;  %v2723_v44 = vpack.i.bf16 %v1064_v4, %v595_v32  ;;  %v1779_v32 = vcombine.low %v3449_v50, %v3460_v47  ;;  %v1780_v61 = vcombine.high %v3449_v50, %v3460_v47  ;;  %v1695_v50 = vcombine.low %v3472_v55, %v3485_v62 }
 0x160   : > { %4851 = vst [vmem:[#allocation19_spill] sm:$0xff] %v3783_v10  ;;  %4853 = vst [vmem:[#allocation20_spill] sm:$0xff] %v3795_v14  ;;  %v422_v57 = vcombine.high %v3783_v10, %v4847_v46  ;;  %v354_v49 = vcombine.high %v3795_v14, %v4847_v46  ;;  %v3835_v47 = vrot.slane %v1764_v52, %v3288_v13 }
 0x161   : > { %2714 = vrot.lane.b32.xlu1 %v2713_v31, %s3048_s17  ;;  %2694 = vrot.lane.b32.xlu0 %v2693_v35, %s3048_s17  ;;  %v825_v35 = vcombine.high %v3777_v21, %v4847_v46  ;;  %v1763_v31 = vcombine.low %v3440_v45, %v3453_v43  ;;  %v1711_v45 = vcombine.low %v3481_v1, %v3492_v58 }
 0x162   : > { %v3797_v36 = vpop.permute.xlu1 %1448  ;;  %v2728_v63 = vpack.i.bf16 %v893_v26, %v422_v57  ;;  %v1133_v26 = vcombine.high %v3546_v60, %v4847_v46  ;;  %v3926_v21 = vcombine.high %v3747_v12, %v4847_v46  ;;  %v827_v39 = vcombine.high %v4858_v53, %v4847_v46 }
 0x163   : > { %v3799_v42 = vpop.permute.xlu0 %1901  ;;  %v2738_v19 = vpack.i.bf16 %v825_v35, %v354_v49  ;;  %v3830_v14 = vrot.slane %v1763_v31, %v3288_v13  ;;  %v3847_v35 = vrot.slane %v1780_v61, %v3288_v13  ;;  %v3852_v52 = vrot.slane %v1711_v45, %v3288_v13 }
 0x164   : > { %v3863_v61 = vrot.slane %v1695_v50, %v3288_v13  ;;  %v423_v45 = vcombine.high %v3591_v20, %v4847_v46  ;;  %v424_v31 = vcombine.high %v3709_v25, %v4847_v46  ;;  %v2009_v20 = vcombine.low %v3683_v54, %v3713_v23 }
 0x165   : > { %2724 = vrot.lane.b32.xlu1 %v2723_v44, %s3049_s19  ;;  %2719 = vrot.lane.b32.xlu0 %v2718_v38, %s3049_s19  ;;  %v664_v44 = vcombine.high %v3540_v48, %v4847_v46  ;;  %v596_v38 = vcombine.high %v3560_v8, %v4847_v46  ;;  %v1065_v48 = vcombine.high %v3566_v27, %v4847_v46 }
 0x166   : > { %v3821_v43 = vpop.permute.xlu1 %1905  ;;  %v3844_v8 = vrot.slane %v1779_v32, %v3288_v13  ;;  %v894_v27 = vcombine.high %v3594_v16, %v4847_v46  ;;  %v895_v32 = vcombine.high %v3695_v34, %v4847_v46  ;;  %v1134_v16 = vcombine.high %v3609_v2, %v4847_v46 }
 0x167   : > { %v3823_v4 = vpop.permute.xlu0 %1909  ;;  %v2733_v60 = vpack.i.bf16 %v1133_v26, %v664_v44  ;;  %v1135_v34 = vcombine.high %v3739_v15, %v4847_v46  ;;  %v355_v44 = vcombine.high %v3644_v22, %v4847_v46  ;;  %v356_v25 = vcombine.high %v3633_v18, %v4847_v46 }
 0x168   : > { %v3887_v50 = vcombine.high %v3675_v5, %v4847_v46  ;;  %v1728_v2 = vcombine.high %v3863_v61, %v3852_v52  ;;  %v2748_v15 = vpack.i.bf16 %v894_v27, %v423_v45  ;;  %v665_v22 = vcombine.high %v3598_v59, %v4847_v46 }
 0x169   : > { %2729 = vrot.lane.b32.xlu1 %v2728_v63, %s3049_s19  ;;  %2739 = vrot.lane.b32.xlu0 %v2738_v19, %s3049_s19  ;;  %v2743_v63 = vpack.i.bf16 %v1065_v48, %v596_v38  ;;  %v2768_v48 = vpack.i.bf16 %v895_v32, %v424_v31  ;;  %v1993_v5 = vcombine.low %v3657_v29, %v3687_v11  ;;  %v4855_v31 = vld [vmem:[#allocation10_spill] sm:$0xff]  ;;  %v4856_v32 = vld [vmem:[#allocation8_spill] sm:$0xff] }
 0x16a   : > { %v3854_v57 = vpop.permute.xlu1 %1913  ;;  %v3903_v19 = vcombine.high %v3655_v6, %v4847_v46  ;;  %v3907_v27 = vcombine.high %v3652_v56, %v4847_v46  ;;  %v1528_v59 = vcombine.low %v4856_v32, %v4855_v31  ;;  %v3917_v45 = vcombine.high %v3692_v41, %v4847_v46 }
 0x16b   : > { %v3856_v49 = vpop.permute.xlu0 %1208  ;;  %v3920_v6 = vrot.slane %v2009_v20, %v3288_v13  ;;  %v2753_v41 = vpack.i.bf16 %v1134_v16, %v665_v22  ;;  %v4857_v20 = vld [vmem:[#allocation12_spill] sm:$0xff]  ;;  %v3945_v24 = vrot.slane %v1993_v5, %v3288_v13  ;;  %v1796_v16 = vcombine.high %v3830_v14, %v3844_v8 }
 0x16c   : > { %v826_v17 = vcombine.high %v4857_v20, %v4847_v46 }
 0x16d   : > { %2734 = vrot.lane.b32.xlu1 %v2733_v60, %s3050_s20  ;;  %2744 = vrot.lane.b32.xlu0 %v2743_v63, %s3050_s20  ;;  %v666_v60 = vcombine.high %v3716_v0, %v4847_v46  ;;  %v4854_v63 = vld [vmem:[#allocation9_spill] sm:$0xff]  ;;  %v1067_v0 = vcombine.high %v3667_v40, %v4847_v46 }
 0x16e   : > { %v3881_v38 = vpop.permute.xlu1 %1212  ;;  %v1544_v18 = vcombine.low %v4854_v63, %v3649_v51  ;;  %v1545_v22 = vcombine.high %v4854_v63, %v3649_v51  ;;  %v1811_v51 = vcombine.low %v3835_v47, %v3847_v35  ;;  %v4860_v63 = vcombine.high %v4856_v32, %v4855_v31 }
 0x16f   : > { %v3891_v26 = vpop.permute.xlu0 %1216  ;;  %v2773_v10 = vpack.i.bf16 %v1135_v34, %v666_v60  ;;  %v3953_v34 = vrot.slane %v1528_v59, %v3288_v13  ;;  %v1942_v60 = vcombine.high %v3821_v43, %v3854_v57  ;;  %v2778_v59 = vpack.i.bf16 %v827_v39, %v356_v25 }
 0x170   : > { %v3942_v12 = vrot.slane %v1544_v18, %v3288_v13  ;;  %v1460_v39 = vcombine.low %v3726_v7, %v3767_v37  ;;  %v4861_v31 = vcombine.high %v3481_v1, %v3492_v58  ;;  %v4862_v1 = vcombine.high %v3472_v55, %v3485_v62 }
 0x171   : > { %2749 = vrot.lane.b32.xlu1 %v2748_v15, %s3050_s20  ;;  %2769 = vrot.lane.b32.xlu0 %v2768_v48, %s3051_s22  ;;  %v3930_v15 = vcombine.high %v3703_v9, %v4847_v46  ;;  %v3933_v48 = vrot.slane %v1728_v2, %v3537_v28  ;;  %v2763_v9 = vpack.i.bf16 %v3887_v50, %v3903_v19 }
 0x172   : > { %v3922_v56 = vpop.permute.xlu1 %1220  ;;  %v2783_v2 = vpack.i.bf16 %v1067_v0, %v3907_v27  ;;  %v2026_v19 = vcombine.high %v3945_v24, %v3920_v6  ;;  %v1941_v50 = vcombine.low %v3821_v43, %v3854_v57  ;;  %v2758_v27 = vpack.i.bf16 %v826_v17, %v355_v44 }
 0x173   : > { %v3935_v40 = vpop.permute.xlu0 %1206  ;;  %v2788_v53 = vpack.i.bf16 %v3917_v45, %v3930_v15  ;;  %v828_v0 = vcombine.high %v3733_v30, %v4847_v46  ;;  %v1561_v45 = vcombine.high %v3953_v34, %v3942_v12  ;;  %v1477_v15 = vcombine.high %v3761_v3, %v3797_v36 }
 0x174   : > { %v1925_v43 = vcombine.low %v3799_v42, %v3823_v4  ;;  %v1926_v57 = vcombine.high %v3799_v42, %v3823_v4  ;;  %v3994_v17 = vrot.slane %v1941_v50, %v3288_v13  ;;  %v1314_v4 = vcombine.low %v3881_v38, %v3922_v56 }
 0x175   : > { %2754 = vrot.lane.b32.xlu1 %v2753_v41, %s3051_s22  ;;  %2774 = vrot.lane.b32.xlu0 %v2773_v10, %s3052_s26  ;;  %v1476_v10 = vcombine.low %v3761_v3, %v3797_v36  ;;  %v2010_v41 = vcombine.high %v3683_v54, %v3713_v23  ;;  %v1461_v3 = vcombine.high %v3726_v7, %v3767_v37 }
 0x176   : > { %v3967_v18 = vpop.permute.xlu1 %1210  ;;  %v3997_v36 = vrot.slane %v1942_v60, %v3288_v13  ;;  %v4000_v23 = vrot.slane %v2026_v19, %v3537_v28  ;;  %v1315_v44 = vcombine.high %v3881_v38, %v3922_v56  ;;  %v4011_v37 = vrot.slane %v1477_v15, %v3288_v13 }
 0x177   : > { %v3971_v5 = vpop.permute.xlu0 %1214  ;;  %v4003_v42 = vrot.slane %v1476_v10, %v3288_v13  ;;  %v4014_v25 = vrot.slane %v1925_v43, %v3288_v13  ;;  %v4017_v20 = vrot.slane %v1926_v57, %v3288_v13  ;;  %v1298_v19 = vcombine.low %v3856_v49, %v3891_v26 }
 0x178   : > { %v1230_v30 = vcombine.low %v3935_v40, %v3971_v5  ;;  %v1299_v60 = vcombine.high %v3856_v49, %v3891_v26  ;;  %v4034_v10 = vrot.slane %v1460_v39, %v3288_v13  ;;  %v4046_v15 = vrot.slane %v1314_v4, %v3288_v13 }
 0x179   : > { %2759 = vrot.lane.b32.xlu1 %v2758_v27, %s3050_s20  ;;  %2779 = vrot.lane.b32.xlu0 %v2778_v59, %s3051_s22  ;;  %v4037_v27 = vrot.slane %v1461_v3, %v3288_v13  ;;  %v1958_v59 = vcombine.high %v4014_v25, %v3994_v17  ;;  %v1973_v49 = vcombine.low %v4017_v20, %v3997_v36 }
 0x17a   : > { %v1219_v54 = vpop.permute.xlu1 %1218  ;;  %v4026_v38 = vrot.slane %v1230_v30, %v3288_v13  ;;  %v2793_v43 = vpack.i.bf16 %v828_v0, %v3926_v21  ;;  %v1994_v57 = vcombine.high %v3657_v29, %v3687_v11  ;;  %v1493_v39 = vcombine.high %v4034_v10, %v4003_v42 }
 0x17b   : > { %v1246_v7 = vcombine.low %v3967_v18, %v1219_v54  ;;  %v4021_v50 = vpop.permute.xlu0 %2133  ;;  %v1508_v30 = vcombine.low %v4037_v27, %v4011_v37  ;;  %v4061_v3 = vrot.slane %v1561_v45, %v3537_v28  ;;  %v4064_v4 = vrot.slane %v1298_v19, %v3288_v13 }
 0x17c   : > { %v2024_v11 = vrot.slane %v2010_v41, %v3288_v13  ;;  %v4083_v19 = vrot.slane %v1973_v49, %v3537_v28  ;;  %v1247_v41 = vcombine.high %v3967_v18, %v1219_v54  ;;  %v4097_v49 = vrot.slane %v1493_v39, %v3537_v28 }
 0x17d   : > { %v4029_v56 = vrot.slane %v1246_v7, %v3288_v13  ;;  %2764 = vrot.lane.b32.xlu1 %v2763_v9, %s3051_s22  ;;  %2784 = vrot.lane.b32.xlu0 %v2783_v2, %s3052_s26  ;;  %v4049_v9 = vrot.slane %v1315_v44, %v3288_v13  ;;  %v1313_v44 = vrot.slane %v1299_v60, %v3288_v13 }
 0x17e   : > { %v4043_v26 = vpop.permute.xlu1 %2137  ;;  %v2798_v45 = vpack.i.bf16 %v4000_v23, %v4061_v3  ;;  %v4080_v7 = vrot.slane %v1958_v59, %v3537_v28  ;;  %v2008_v59 = vrot.slane %v1994_v57, %v3288_v13  ;;  %4859 = vst [vmem:[#allocation9_spill] sm:$0xff] %v4097_v49  ;;  %v1231_v33 = vcombine.high %v3935_v40, %v3971_v5 }
 0x17f   : > { %v1263_v2 = vcombine.high %v4026_v38, %v4029_v56  ;;  %v4073_v21 = vpop.permute.xlu0 %2141  ;;  %v1346_v60 = vcombine.low %v1313_v44, %v4049_v9  ;;  %v4106_v18 = vrot.slane %v1508_v30, %v3537_v28  ;;  %v1261_v5 = vrot.slane %v1247_v41, %v3288_v13 }
 0x180   : > { %v2041_v54 = vcombine.low %v2008_v59, %v2024_v11  ;;  %v2042_v57 = vcombine.high %v2008_v59, %v2024_v11  ;;  %v2803_v40 = vpack.i.bf16 %v4080_v7, %v4097_v49  ;;  %v1726_v32 = vrot.slane %v4861_v31, %v3288_v13 }
 0x181   : > { %2794 = vrot.lane.b32.xlu1 %v2793_v43, %s3052_s26  ;;  %2789 = vrot.lane.b32.xlu0 %v2788_v53, %s3052_s26  ;;  %v4070_v29 = vrot.slane %v1263_v2, %v3537_v28  ;;  %v1331_v53 = vcombine.high %v4064_v4, %v4046_v15  ;;  %v1559_v43 = vrot.slane %v1545_v22, %v3288_v13 }
 0x182   : > { %v4075_v0 = vpop.permute.xlu1 %2145  ;;  %v1543_v22 = vrot.slane %v4860_v63, %v3288_v13  ;;  %v2823_v30 = vpack.i.bf16 %v4083_v19, %v4106_v18  ;;  %v4132_v63 = vrot.slane %v1796_v16, %v3537_v28  ;;  %v1245_v49 = vrot.slane %v1231_v33, %v3288_v13 }
 0x183   : > { %v2818_v2 = vpack.i.bf16 %v3933_v48, %v4070_v29  ;;  %v2132_v59 = vpop.permute.xlu0 %2131  ;;  %v1710_v58 = vrot.slane %v4862_v1, %v3288_v13  ;;  %v4146_v16 = vrot.slane %v2041_v54, %v3537_v28  ;;  %v1812_v55 = vcombine.high %v3835_v47, %v3847_v35 }
 0x184   : > { %v1576_v11 = vcombine.low %v1543_v22, %v1559_v43  ;;  %v1577_v41 = vcombine.high %v1543_v22, %v1559_v43  ;;  %v1278_v43 = vcombine.low %v1245_v49, %v1261_v5  ;;  %v1279_v54 = vcombine.high %v1245_v49, %v1261_v5 }
 0x185   : > { %2799 = vrot.lane.b32.xlu0 %v2798_v45, %s3046_s7  ;;  %2819 = vrot.lane.b32.xlu1 %v2818_v2, %s3046_s7  ;;  %v4122_v45 = vrot.slane %v1331_v53, %v3537_v28  ;;  %v4125_v2 = vrot.slane %v1346_v60, %v3537_v28  ;;  %v4138_v53 = vrot.slane %v1811_v51, %v3537_v28 }
 0x186   : > { %v4114_v39 = vpop.permute.xlu1 %2135  ;;  %v1347_v60 = vcombine.high %v1313_v44, %v4049_v9  ;;  %v4153_v51 = vrot.slane %v2042_v57, %v3537_v28  ;;  %v4163_v62 = vrot.slane %v1577_v41, %v3537_v28  ;;  %v1743_v9 = vcombine.low %v1710_v58, %v1726_v32 }
 0x187   : > { %v2808_v33 = vpack.i.bf16 %v4132_v63, %v4122_v45  ;;  %v2828_v22 = vpack.i.bf16 %v4138_v53, %v4125_v2  ;;  %v1974_v44 = vcombine.high %v4017_v20, %v3997_v36  ;;  %v2140_v57 = vpop.permute.xlu0 %2139  ;;  %v2239_v47 = vcombine.low %v4043_v26, %v4075_v0 }
 0x188   : > { %v2833_v41 = vpack.i.bf16 %v4153_v51, %v4163_v62  ;;  %v4178_v1 = vrot.slane %v1278_v43, %v3537_v28  ;;  %v1509_v36 = vcombine.high %v4037_v27, %v4011_v37  ;;  %v4183_v20 = vrot.slane %v1812_v55, %v3537_v28 }
 0x189   : > { %2804 = vrot.lane.b32.xlu0 %v2803_v40, %s3046_s7  ;;  %2824 = vrot.lane.b32.xlu1 %v2823_v30, %s3047_s8  ;;  %v4156_v30 = vrot.slane %v1576_v11, %v3537_v28  ;;  %v4170_v11 = vrot.slane %v1347_v60, %v3537_v28  ;;  %v1744_v49 = vcombine.high %v1710_v58, %v1726_v32 }
 0x18a   : > { %v2144_v40 = vpop.permute.xlu1 %2143  ;;  %v2223_v5 = vcombine.low %v4021_v50, %v4073_v21  ;;  %v2155_v60 = vcombine.low %v2132_v59, %v2140_v57  ;;  %v2240_v43 = vcombine.high %v4043_v26, %v4075_v0  ;;  %v4197_v27 = vrot.slane %v1974_v44, %v3537_v28 }
 0x18b   : > { %v2813_v31 = vpack.i.bf16 %v4146_v16, %v4156_v30  ;;  %v2171_v35 = vcombine.low %v4114_v39, %v2144_v40  ;;  %v2848_v37 = vpack.i.bf16 %v4183_v20, %v4170_v11  ;;  %v4200_v32 = vrot.slane %v1279_v54, %v3537_v28 }
 0x18c   : > { %v4203_v58 = vrot.slane %v2239_v47, %v3288_v13  ;;  %v2224_v0 = vcombine.high %v4021_v50, %v4073_v21  ;;  %v4217_v44 = vrot.slane %v1744_v49, %v3537_v28  ;;  %v4220_v54 = vrot.slane %v2223_v5, %v3288_v13 }
 0x18d   : > { %2809 = vrot.lane.b32.xlu0 %v2808_v33, %s3046_s7  ;;  %2829 = vrot.lane.b32.xlu1 %v2828_v22, %s3047_s8  ;;  %v4190_v33 = vrot.slane %v1743_v9, %v3537_v28  ;;  %v2172_v22 = vcombine.high %v4114_v39, %v2144_v40  ;;  %v4207_v55 = vrot.slane %v2171_v35, %v3288_v13 }
 0x18e   : > { %v4214_v9 = vrot.slane %v1509_v36, %v3537_v28  ;;  %v4223_v39 = vrot.slane %v2155_v60, %v3288_v13  ;;  %v2853_v21 = vpack.i.bf16 %v4217_v44, %v4200_v32  ;;  %v2254_v40 = vrot.slane %v2240_v43, %v3288_v13 }
 0x18f   : > { %v2838_v26 = vpack.i.bf16 %v4190_v33, %v4178_v1  ;;  %v2256_v47 = vcombine.high %v4220_v54, %v4203_v58  ;;  %v2238_v35 = vrot.slane %v2224_v0, %v3288_v13  ;;  %v2025_v36 = vcombine.low %v3945_v24, %v3920_v6 }
 0x190   : > { %v2843_v50 = vpack.i.bf16 %v4197_v27, %v4214_v9  ;;  %v1957_v49 = vcombine.low %v4014_v25, %v3994_v17  ;;  %v1330_v17 = vcombine.low %v4064_v4, %v4046_v15 }
 0x191   : > { %2814 = vrot.lane.b32.xlu0 %v2813_v31, %s3047_s8  ;;  %2834 = vrot.lane.b32.xlu1 %v2833_v41, %s3048_s17  ;;  %v2156_v31 = vcombine.high %v2132_v59, %v2140_v57  ;;  %v2186_v59 = vrot.slane %v2172_v22, %v3288_v13  ;;  %v2188_v57 = vcombine.high %v4223_v39, %v4207_v55 }
 0x192   : > { %v2271_v5 = vcombine.low %v2238_v35, %v2254_v40  ;;  %v4246_v43 = vrot.slane %v2256_v47, %v3537_v28  ;;  %v1492_v22 = vcombine.low %v4034_v10, %v4003_v42  ;;  %v4260_v24 = vrot.slane %v2025_v36, %v3537_v28 }
 0x193   : > { %v2170_v41 = vrot.slane %v2156_v31, %v3288_v13  ;;  %v1560_v13 = vcombine.low %v3953_v34, %v3942_v12  ;;  %v4263_v6 = vrot.slane %v1957_v49, %v3537_v28  ;;  %v2272_v25 = vcombine.high %v2238_v35, %v2254_v40 }
 0x194   : > { %v4268_v34 = vrot.slane %v2271_v5, %v3537_v28  ;;  %v4279_v0 = vrot.slane %v1492_v22, %v3537_v28  ;;  %v2057_v15 = vcombine.high %v4260_v24, %v4847_v46  ;;  %v4288_v4 = vrot.slane %v1330_v17, %v3537_v28 }
 0x195   : > { %2839 = vrot.lane.b32.xlu0 %v2838_v26, %s3047_s8  ;;  %2849 = vrot.lane.b32.xlu1 %v2848_v37, %s3048_s17  ;;  %v2203_v60 = vcombine.low %v2170_v41, %v2186_v59  ;;  %v4249_v37 = vrot.slane %v2188_v57, %v3537_v28  ;;  %v2204_v12 = vcombine.high %v2170_v41, %v2186_v59 }
 0x196   : > { %v4274_v10 = vrot.slane %v1560_v13, %v3537_v28  ;;  %v1795_v26 = vcombine.low %v3830_v14, %v3844_v8  ;;  %v4291_v31 = vrot.slane %v2272_v25, %v3537_v28  ;;  %v1989_v8 = vcombine.high %v4263_v6, %v4847_v46 }
 0x197   : > { %v4271_v42 = vrot.slane %v2203_v60, %v3537_v28  ;;  %v4294_v14 = vrot.slane %v2204_v12, %v3537_v28  ;;  %v1262_v59 = vcombine.low %v4026_v38, %v4029_v56  ;;  %v1363_v57 = vcombine.high %v4122_v45, %v4847_v46 }
 0x198   : > { %v4307_v40 = vrot.slane %v1795_v26, %v3537_v28  ;;  %v1362_v41 = vcombine.high %v4288_v4, %v4847_v46  ;;  %v1727_v36 = vcombine.low %v3863_v61, %v3852_v52  ;;  %v1828_v49 = vcombine.high %v4132_v63, %v4847_v46 }
 0x199   : > { %2844 = vrot.lane.b32.xlu0 %v2843_v50, %s3048_s17  ;;  %2854 = vrot.lane.b32.xlu1 %v2853_v21, %s3048_s17  ;;  %v1592_v50 = vcombine.high %v4274_v10, %v4847_v46  ;;  %v1524_v21 = vcombine.high %v4279_v0, %v4847_v46  ;;  %v2058_v56 = vcombine.high %v4000_v23, %v4847_v46 }
 0x19a   : > { %v1827_v38 = vcombine.high %v4307_v40, %v4847_v46  ;;  %v4326_v45 = vrot.slane %v1262_v59, %v3537_v28  ;;  %v2059_v5 = vcombine.high %v4146_v16, %v4847_v46  ;;  %v2888_v52 = vpack.i.bf16 %v1828_v49, %v1363_v57 }
 0x19b   : > { %v2858_v47 = vpack.i.bf16 %v2057_v15, %v1592_v50  ;;  %v2863_v35 = vpack.i.bf16 %v1989_v8, %v1524_v21  ;;  %v1593_v63 = vcombine.high %v4061_v3, %v4847_v46  ;;  %v1594_v60 = vcombine.high %v4156_v30, %v4847_v46  ;;  %v4863_v15 = vld [vmem:[#allocation9_spill] sm:$0xff] }
 0x19c   : > { %v2868_v61 = vpack.i.bf16 %v1827_v38, %v1362_v41  ;;  %v4337_v23 = vrot.slane %v1727_v36, %v3537_v28  ;;  %v1295_v13 = vcombine.high %v4070_v29, %v4847_v46  ;;  %v1294_v17 = vcombine.high %v4326_v45, %v4847_v46 }
 0x19d   : > { %2324 = vrot.lane.b32.xlu0 %v4246_v43, %s3046_s7  ;;  %2296 = vrot.lane.b32.xlu1 %v4249_v37, %s3046_s7  ;;  %v2893_v22 = vpack.i.bf16 %v2059_v5, %v1594_v60  ;;  %v2873_v16 = vpack.i.bf16 %v2058_v56, %v1593_v63  ;;  %v1760_v3 = vcombine.high %v3933_v48, %v4847_v46  ;;  %s4760_s7 = scalar_lea.hbm %s4807_s3, %s2587_s10 }
 0x19e   : > { %v1759_v30 = vcombine.high %v4337_v23, %v4847_v46  ;;  %v1990_v25 = vcombine.high %v4080_v7, %v4847_v46  ;;  %v1991_v29 = vcombine.high %v4083_v19, %v4847_v46  ;;  %v1525_v8 = vcombine.high %v4863_v15, %v4847_v46 }
 0x19f   : > { %v2898_v12 = vpack.i.bf16 %v1760_v3, %v1295_v13  ;;  %v1526_v48 = vcombine.high %v4106_v18, %v4847_v46  ;;  %v1364_v50 = vcombine.high %v4125_v2, %v4847_v46  ;;  %v1296_v7 = vcombine.high %v4178_v1, %v4847_v46 }
 0x1a0   : > { %v2878_v26 = vpack.i.bf16 %v1759_v30, %v1294_v17  ;;  %v2883_v19 = vpack.i.bf16 %v1990_v25, %v1525_v8  ;;  %v1761_v59 = vcombine.high %v4190_v33, %v4847_v46  ;;  %v2060_v18 = vcombine.high %v4153_v51, %v4847_v46 }
 0x1a1   : > { %2332 = vrot.lane.b32.xlu0 %v4268_v34, %s3047_s8  ;;  %2304 = vrot.lane.b32.xlu1 %v4271_v42, %s3047_s8  ;;  %v2903_v21 = vpack.i.bf16 %v1991_v29, %v1526_v48  ;;  %v1992_v2 = vcombine.high %v4197_v27, %v4847_v46  ;;  %v2255_v51 = vcombine.low %v4220_v54, %v4203_v58  ;;  %v3053_v13 = vmov 0   ;;  %s2485_s8 = scalar_lea.sflag [#allocation4], %s3179_s5 }
 0x1a2   : > { %v2918_v57 = vpack.i.bf16 %v1761_v59, %v1296_v7  ;;  %v2187_v27 = vcombine.low %v4223_v39, %v4207_v55  ;;  %v1365_v36 = vcombine.high %v4170_v11, %v4847_v46  ;;  %v1830_v38 = vcombine.high %v4183_v20, %v4847_v46  ;;  %2938 = vset.pattern.permute.xlu0 %v3053_v13 }
 0x1a3   : > { %v1762_v56 = vcombine.high %v4217_v44, %v4847_v46  ;;  %v4398_v58 = vrot.slane %v2255_v51, %v3537_v28  ;;  %v2290_v30 = vcombine.high %v4291_v31, %v4847_v46  ;;  %v2222_v25 = vcombine.high %v4294_v14, %v4847_v46 }
 0x1a4   : > { %v4401_v11 = vrot.slane %v2187_v27, %v3537_v28  ;;  %v2928_v54 = vpack.i.bf16 %v1830_v38, %v1365_v36 }
 0x1a5   : > { %2340 = vrot.lane.b32.xlu0 %v4291_v31, %s3048_s17  ;;  %2312 = vrot.lane.b32.xlu1 %v4294_v14, %s3048_s17  ;;  %v2287_v5 = vcombine.high %v4398_v58, %v4847_v46  ;;  %s2969_s17 = scalar_lea.vmem %s4762_s4, 256 }
 0x1a6   : > { %v2219_v28 = vcombine.high %v4401_v11, %v4847_v46  ;;  %p2970_p6 = scmp.ne.s32.totalorder %s4762_s4, %s2969_s17 }
 0x1a8   : > { %p2971_p12 = pnand %p2970_p6, %p4876_p11 }
 0x1a9   : > { %2859 = vrot.lane.b32.xlu0 %v2858_v47, %s3049_s19  ;;  %2864 = vrot.lane.b32.xlu1 %v2863_v35, %s3049_s19  ;;  %v1829_v47 = vcombine.high %v4138_v53, %v4847_v46  ;;  %v1595_v35 = vcombine.high %v4163_v62, %v4847_v46  ;;  %v1527_v53 = vcombine.high %v4214_v9, %v4847_v46 }
 0x1aa   : > { %v1297_v62 = vcombine.high %v4200_v32, %v4847_v46  ;;  %p2972_p13 = pneg %p2971_p12 }
 0x1ab   : > { %v2908_v1 = vpack.i.bf16 %v1829_v47, %v1364_v50  ;;  %v2923_v33 = vpack.i.bf16 %v1992_v2, %v1527_v53  ;;  %v2913_v41 = vpack.i.bf16 %v2060_v18, %v1595_v35 }
 0x1ac   : > { %v2933_v39 = vpack.i.bf16 %v1762_v56, %v1297_v62 }
 0x1ad   : > { %2889 = vrot.lane.b32.xlu0 %v2888_v52, %s3050_s20  ;;  %2869 = vrot.lane.b32.xlu1 %v2868_v61, %s3049_s19  ;;  %v2288_v52 = vcombine.high %v4246_v43, %v4847_v46  ;;  %v2220_v61 = vcombine.high %v4249_v37, %v4847_v46  ;;  %v2289_v43 = vcombine.high %v4268_v34, %v4847_v46  ;;  %v289_v34 = vld [vmem:[%s4806_s2] sm:$0xff] }
 0x1ae   : > { %v2221_v37 = vcombine.high %v4271_v42, %v4847_v46 }
 0x1af   : > { %v4387_v49 = vpop.permute.xlu0 %2659 }
 0x1b1   : > { %2894 = vrot.lane.b32.xlu0 %v2893_v22, %s3051_s22  ;;  %2874 = vrot.lane.b32.xlu1 %v2873_v16, %s3050_s20 }
 0x1b5   : > { %2899 = vrot.lane.b32.xlu0 %v2898_v12, %s3050_s20  ;;  %2879 = vrot.lane.b32.xlu1 %v2878_v26, %s3049_s19  ;;  %v2662_v12 = vunpack.i.h.bf16 %v4387_v49  ;;  %v2661_v26 = vunpack.i.l.bf16 %v4387_v49 }
 0x1b7   : > { %v4403_v32 = vpop.permute.xlu0 %2664 }
 0x1b8   : > { %v2667_v31 = vunpack.i.h.bf16 %v4403_v32  ;;  %v2666_v46 = vunpack.i.l.bf16 %v4403_v32 }
 0x1b9   : > { %2904 = vrot.lane.b32.xlu0 %v2903_v21, %s3051_s22  ;;  %2884 = vrot.lane.b32.xlu1 %v2883_v19, %s3050_s20 }
 0x1bd   : > { %2919 = vrot.lane.b32.xlu0 %v2918_v57, %s3051_s22  ;;  %2909 = vrot.lane.b32.xlu1 %v2908_v1, %s3051_s22 }
 0x1bf   : > { %v4389_v9 = vpop.permute.xlu1 %2669 }
 0x1c0   : > { %v2672_v14 = vunpack.i.h.bf16 %v4389_v9  ;;  %v2671_v15 = vunpack.i.l.bf16 %v4389_v9 }
 0x1c1   : > { %2924 = vrot.lane.b32.xlu0 %v2923_v33, %s3052_s26  ;;  %2914 = vrot.lane.b32.xlu1 %v2913_v41, %s3052_s26 }
 0x1c3   : > { %v4405_v55 = vpop.permute.xlu1 %2674 }
 0x1c4   : > { %v2677_v50 = vunpack.i.h.bf16 %v4405_v55  ;;  %v2676_v7 = vunpack.i.l.bf16 %v4405_v55 }
 0x1c5   : > { %2929 = vrot.lane.b32.xlu0 %v2928_v54, %s3052_s26  ;;  %2934 = vrot.lane.b32.xlu1 %v2933_v39, %s3052_s26 }
 0x1c7   : > { %v4409_v20 = vpop.permute.xlu1 %2699  ;;  %v4411_v44 = vpop.permute.xlu0 %2679 }
 0x1c8   : > { %v2702_v21 = vunpack.i.h.bf16 %v4409_v20  ;;  %v2701_v19 = vunpack.i.l.bf16 %v4409_v20  ;;  %v2682_v47 = vunpack.i.h.bf16 %v4411_v44  ;;  %v2681_v59 = vunpack.i.l.bf16 %v4411_v44 }
 0x1c9   : > { %2320 = vrot.lane.b32.xlu0 %v2287_v5, %s3049_s19  ;;  %2292 = vrot.lane.b32.xlu1 %v2219_v28, %s3049_s19  ;;  %v4864_v28 = vld [vmem:[#allocation16_spill] sm:$0xff]  ;;  %s2973_s19 = sshll.u32 %s3054_s16, 4  ;;  %s2974_s19 = int_to_ptr.vmem [resolvable:$false] %s2973_s19 }
 0x1ca   : > { %p2976_p8 = scmp.lt.s32.totalorder %s4762_s4, %s2974_s19 }
 0x1cb   : > { %v4423_v63 = vpop.permute.xlu1 %2704  ;;  %v4425_v60 = vpop.permute.xlu0 %2684 }
 0x1cc   : > { %v2707_v18 = vunpack.i.h.bf16 %v4423_v63  ;;  %v2706_v2 = vunpack.i.l.bf16 %v4423_v63  ;;  %v2687_v57 = vunpack.i.h.bf16 %v4425_v60  ;;  %v2686_v1 = vunpack.i.l.bf16 %v4425_v60 }
 0x1cd   : > { %2328 = vrot.lane.b32.xlu0 %v2288_v52, %s3050_s20  ;;  %2300 = vrot.lane.b32.xlu1 %v2220_v61, %s3050_s20  ;;  %v4865_v61 = vld [vmem:[#allocation14_spill] sm:$0xff]  ;;  %s2975_s20 = scalar_lea.vmem %s2974_s19, 512 }
 0x1ce   : > { %p2977_p10 = scmp.lt.s32.totalorder %s2975_s20, %s2969_s17 }
 0x1cf   : > { %v4429_v22 = vpop.permute.xlu1 %2709  ;;  %v4431_v16 = vpop.permute.xlu0 %2689 }
 0x1d0   : > { %v2712_v49 = vunpack.i.h.bf16 %v4429_v22  ;;  %v2711_v9 = vunpack.i.l.bf16 %v4429_v22  ;;  %v2692_v38 = vunpack.i.h.bf16 %v4431_v16  ;;  %v2691_v56 = vunpack.i.l.bf16 %v4431_v16  ;;  %p2978_p0 = por %p2977_p10, %p2976_p8 }
 0x1d1   : > { %2336 = vrot.lane.b32.xlu0 %v2289_v43, %s3051_s22  ;;  %2308 = vrot.lane.b32.xlu1 %v2221_v37, %s3051_s22 }
 0x1d2   : > { %p2979_p2 = pnand %p2978_p0, %p2972_p13 }
 0x1d3   : > { %v4439_v17 = vpop.permute.xlu1 %2714  ;;  %v4441_v3 = vpop.permute.xlu0 %2694 }
 0x1d4   : > { %v2697_v39 = vunpack.i.h.bf16 %v4441_v3  ;;  %v2696_v5 = vunpack.i.l.bf16 %v4441_v3 }
 0x1d5   : > { %2344 = vrot.lane.b32.xlu0 %v2290_v30, %s3052_s26  ;;  %2316 = vrot.lane.b32.xlu1 %v2222_v25, %s3052_s26  ;;  %v4866_v30 = vld [vmem:[#allocation15_spill] sm:$0xff]  ;;  %v4867_v25 = vld [vmem:[#allocation13_spill] sm:$0xff] }
 0x1d7   : > { %v2725_v42 = vpop.permute.xlu1 %2724  ;;  %v2720_v29 = vpop.permute.xlu0 %2719 }
 0x1d8   : > { %v2722_v35 = vunpack.i.h.bf16 %v2720_v29  ;;  %v2721_v53 = vunpack.i.l.bf16 %v2720_v29  ;;  %v2727_v33 = vunpack.i.h.bf16 %v2725_v42  ;;  %v2726_v41 = vunpack.i.l.bf16 %v2725_v42  ;;  %v4868_v42 = vld [vmem:[#allocation17_spill] sm:$0xff] }
 0x1d9   : > { %2396 = vperm.xlu0 %2938, %v289_v34  }
 0x1da   : > { %v1199_v52 = vsel %vm482_vm5, %v4864_v28, %v2722_v35  ;;  %v730_v13 = vsel %vm482_vm5, %v4865_v61, %v2721_v53  ;;  %v1192_v16 = vsel %vm482_vm5, %v4866_v30, %v2727_v33  ;;  %v723_v34 = vsel %vm482_vm5, %v4867_v25, %v2726_v41 }
 0x1db   : > { %v2730_v8 = vpop.permute.xlu1 %2729  ;;  %v4458_v48 = vpop.permute.xlu0 %2739  ;;  %v731_v33 = vsel %vm484_vm6, %v730_v13, %v2661_v26  ;;  %v1200_v61 = vsel %vm484_vm6, %v1199_v52, %v2662_v12 }
 0x1dc   : > { %v2732_v51 = vunpack.i.h.bf16 %v2730_v8  ;;  %v2731_v27 = vunpack.i.l.bf16 %v2730_v8  ;;  %v4869_v8 = vld [vmem:[#allocation19_spill] sm:$0xff]  ;;  %v2742_v35 = vunpack.i.h.bf16 %v4458_v48  ;;  %v2741_v53 = vunpack.i.l.bf16 %v4458_v48 }
 0x1dd   : > { %v724_v48 = vsel %vm484_vm6, %v723_v34, %v2666_v46 }
 0x1de   : > { %v960_v29 = vsel %vm482_vm5, %v4868_v42, %v2732_v51  ;;  %v496_v3 = vsel %vm482_vm5, %v4869_v8, %v2731_v27 }
 0x1df   : > { %v2735_v36 = vpop.permute.xlu1 %2734  ;;  %v2745_v62 = vpop.permute.xlu0 %2744  ;;  %v497_v27 = vsel %vm484_vm6, %v496_v3, %v2671_v15  ;;  %v961_v42 = vsel %vm484_vm6, %v960_v29, %v2672_v14 }
 0x1e0   : > { %v2737_v43 = vunpack.i.h.bf16 %v2735_v36  ;;  %v2736_v37 = vunpack.i.l.bf16 %v2735_v36  ;;  %v2747_v41 = vunpack.i.h.bf16 %v2745_v62  ;;  %v2746_v30 = vunpack.i.l.bf16 %v2745_v62  ;;  %v4870_v62 = vld [vmem:[#allocation18_spill] sm:$0xff] }
 0x1e1   : > { %v953_v13 = vsel %vm482_vm5, %v4870_v62, %v2742_v35 }
 0x1e2   : > { %v732_v51 = vsel %vm486_vm7, %v731_v33, %v2736_v37  ;;  %v1201_v25 = vsel %vm486_vm7, %v1200_v61, %v2737_v43  ;;  %v4871_v37 = vld [vmem:[#allocation20_spill] sm:$0xff]  ;;  %v725_v14 = vsel %vm486_vm7, %v724_v48, %v2746_v30  ;;  %v954_v55 = vsel %vm484_vm6, %v953_v13, %v2682_v47 }
 0x1e3   : > { %v2750_v32 = vpop.permute.xlu1 %2749  ;;  %v2770_v54 = vpop.permute.xlu0 %2769  ;;  %v483_v43 = vsel %vm482_vm5, %v4871_v37, %v2741_v53 }
 0x1e4   : > { %v2752_v28 = vunpack.i.h.bf16 %v2750_v32  ;;  %v2751_v36 = vunpack.i.l.bf16 %v2750_v32  ;;  %v1193_v32 = vsel %vm484_vm6, %v1192_v16, %v2667_v31  ;;  %v733_v31 = vsel %vm488_vm8, %v732_v51, %v2676_v7 }
 0x1e5   : > { %v1194_v46 = vsel %vm486_vm7, %v1193_v32, %v2747_v41  ;;  %v1202_v16 = vsel %vm488_vm8, %v1201_v25, %v2677_v50  ;;  %v485_v61 = vsel %vm484_vm6, %v483_v43, %v2681_v59 }
 0x1e6   : > { %v498_v8 = vsel %vm486_vm7, %v497_v27, %v2751_v36  ;;  %v962_v26 = vsel %vm486_vm7, %v961_v42, %v2752_v28  ;;  %v2772_v28 = vunpack.i.h.bf16 %v2770_v54  ;;  %v2771_v36 = vunpack.i.l.bf16 %v2770_v54 }
 0x1e7   : > { %v2755_v12 = vpop.permute.xlu1 %2754  ;;  %v2775_v52 = vpop.permute.xlu0 %2774  ;;  %v499_v34 = vsel %vm488_vm8, %v498_v8, %v2691_v56  ;;  %v963_v29 = vsel %vm488_vm8, %v962_v26, %v2692_v38  ;;  %v726_v38 = vsel %vm488_vm8, %v725_v14, %v2686_v1  ;;  %v1195_v54 = vsel %vm488_vm8, %v1194_v46, %v2687_v57 }
 0x1e8   : > { %v2757_v15 = vunpack.i.h.bf16 %v2755_v12  ;;  %v2756_v3 = vunpack.i.l.bf16 %v2755_v12  ;;  %v500_v41 = vsel %vm490_vm9, %v499_v34, %v2771_v36  ;;  %v964_v59 = vsel %vm490_vm9, %v963_v29, %v2772_v28 }
 0x1e9   : > { %v2777_v1 = vunpack.i.h.bf16 %v2775_v52  ;;  %v2776_v42 = vunpack.i.l.bf16 %v2775_v52  ;;  %v501_v12 = vsel %vm492_vm10, %v500_v41, %v2711_v9  ;;  %v965_v20 = vsel %vm492_vm10, %v964_v59, %v2712_v49 }
 0x1ea   : > { %v734_v35 = vsel %vm490_vm9, %v733_v31, %v2756_v3  ;;  %v1203_v53 = vsel %vm490_vm9, %v1202_v16, %v2757_v15  ;;  %v4872_v49 = vunpack.i.l.bf16 %v4439_v17  ;;  %v4873_v14 = vunpack.i.h.bf16 %v4439_v17 }
 0x1eb   : > { %v2760_v33 = vpop.permute.xlu1 %2759  ;;  %v2780_v50 = vpop.permute.xlu0 %2779  ;;  %v735_v44 = vsel %vm492_vm10, %v734_v35, %v2696_v5  ;;  %v1204_v47 = vsel %vm492_vm10, %v1203_v53, %v2697_v39 }
 0x1ec   : > { %v2762_v7 = vunpack.i.h.bf16 %v2760_v33  ;;  %v2761_v56 = vunpack.i.l.bf16 %v2760_v33  ;;  %v2782_v25 = vunpack.i.h.bf16 %v2780_v50  ;;  %v2781_v27 = vunpack.i.l.bf16 %v2780_v50 }
 0x1ed   : > { %v736_v52 = vsel %vm494_vm11, %v735_v44, %v2776_v42 }
 0x1ee   : > { %v487_v30 = vsel %vm486_vm7, %v485_v61, %v2761_v56  ;;  %v955_v51 = vsel %vm486_vm7, %v954_v55, %v2762_v7  ;;  %v2364_v53 = vrot.slane %v736_v52, 4 }
 0x1ef   : > { %v489_v60 = vsel %vm488_vm8, %v487_v30, %v2701_v19  ;;  %v956_v57 = vsel %vm488_vm8, %v955_v51, %v2702_v21  ;;  %v2765_v48 = vpop.permute.xlu1 %2764  ;;  %v2785_v5 = vpop.permute.xlu0 %2784  ;;  %v1205_v21 = vsel %vm494_vm11, %v1204_v47, %v2777_v1 }
 0x1f0   : > { %v491_v39 = vsel %vm490_vm9, %v489_v60, %v2781_v27  ;;  %v957_v32 = vsel %vm490_vm9, %v956_v57, %v2782_v25  ;;  %v2767_v8 = vunpack.i.h.bf16 %v2765_v48  ;;  %v2766_v26 = vunpack.i.l.bf16 %v2765_v48 }
 0x1f1   : > { %v2787_v13 = vunpack.i.h.bf16 %v2785_v5  ;;  %v2786_v37 = vunpack.i.l.bf16 %v2785_v5  ;;  %v493_v3 = vsel %vm492_vm10, %v491_v39, %v4872_v49  ;;  %v958_v46 = vsel %vm492_vm10, %v957_v32, %v4873_v14 }
 0x1f2   : > { %v727_v19 = vsel %vm490_vm9, %v726_v38, %v2766_v26  ;;  %v1196_v62 = vsel %vm490_vm9, %v1195_v54, %v2767_v8  ;;  %v2370_v28 = vrot.slane %v1205_v21, 4 }
 0x1f3   : > { %v728_v43 = vsel %vm492_vm10, %v727_v19, %v2706_v2  ;;  %v1197_v9 = vsel %vm492_vm10, %v1196_v62, %v2707_v18  ;;  %v2795_v15 = vpop.permute.xlu1 %2794  ;;  %v2790_v22 = vpop.permute.xlu0 %2789 }
 0x1f4   : > { %v729_v31 = vsel %vm494_vm11, %v728_v43, %v2786_v37  ;;  %v1198_v16 = vsel %vm494_vm11, %v1197_v9, %v2787_v13  ;;  %v2797_v34 = vunpack.i.h.bf16 %v2795_v15  ;;  %v2796_v2 = vunpack.i.l.bf16 %v2795_v15 }
 0x1f5   : > { %v2363_v29 = vrot.slane %v729_v31, 4  ;;  %v2369_v63 = vrot.slane %v1198_v16, 4  ;;  %v2792_v35 = vunpack.i.h.bf16 %v2790_v22  ;;  %v2791_v18 = vunpack.i.l.bf16 %v2790_v22 }
 0x1f6   : > { %v495_v36 = vsel %vm494_vm11, %v493_v3, %v2796_v2  ;;  %v959_v33 = vsel %vm494_vm11, %v958_v46, %v2797_v34 }
 0x1f7   : > { %v4570_v61 = vpop.permute.xlu1 %2819  ;;  %v4572_v17 = vpop.permute.xlu0 %2799  ;;  %v502_v55 = vsel %vm494_vm11, %v501_v12, %v2791_v18  ;;  %v966_v50 = vsel %vm494_vm11, %v965_v20, %v2792_v35  ;;  %v2386_v7 = vsel %vm2385_vm12, %v495_v36, %v2363_v29  ;;  %v2388_v56 = vsel %vm2385_vm12, %v959_v33, %v2369_v63 }
 0x1f8   : > { %v2387_v38 = vsel %vm2385_vm12, %v502_v55, %v2364_v53  ;;  %v2389_v54 = vsel %vm2385_vm12, %v966_v50, %v2370_v28  ;;  %v2590_v41 = vpack.c.bf16 %v2388_v56, %v2386_v7  ;;  %v2822_v20 = vunpack.i.h.bf16 %v4570_v61 }
 0x1f9   : > { %v2588_v59 = vpack.c.bf16 %v2389_v54, %v2387_v38  ;;  %v2821_v21 = vunpack.i.l.bf16 %v4570_v61  ;;  %v2802_v19 = vunpack.i.h.bf16 %v4572_v17  ;;  %v2801_v62 = vunpack.i.l.bf16 %v4572_v17 }
 0x1fb   : > { %v4580_v44 = vpop.permute.xlu1 %2824  ;;  %v4582_v47 = vpop.permute.xlu0 %2804  ;;  %2589 = vmatprep.subr.bf16.mxu0 %v2588_v59 }
 0x1fc   : > { %2591 = vmatpush1.bf16.msra.mxu0 %v2590_v41  ;;  %v2827_v13 = vunpack.i.h.bf16 %v4580_v44  ;;  %v2826_v37 = vunpack.i.l.bf16 %v4580_v44  ;;  %v2807_v43 = vunpack.i.h.bf16 %v4582_v47  ;;  %v2806_v9 = vunpack.i.l.bf16 %v4582_v47 }
 0x1ff   : > { %v4584_v30 = vpop.permute.xlu1 %2829  ;;  %v2810_v51 = vpop.permute.xlu0 %2809 }
 0x200   : > { %v2832_v49 = vunpack.i.h.bf16 %v4584_v30  ;;  %v2831_v3 = vunpack.i.l.bf16 %v4584_v30  ;;  %v2812_v31 = vunpack.i.h.bf16 %v2810_v51  ;;  %v2811_v16 = vunpack.i.l.bf16 %v2810_v51 }
 0x203   : > { %v4586_v25 = vpop.permute.xlu1 %2834  ;;  %v4588_v27 = vpop.permute.xlu0 %2814 }
 0x204   : > { %v2837_v34 = vunpack.i.h.bf16 %v4586_v25  ;;  %v2836_v2 = vunpack.i.l.bf16 %v4586_v25  ;;  %v2817_v53 = vunpack.i.h.bf16 %v4588_v27  ;;  %v2816_v28 = vunpack.i.l.bf16 %v4588_v27 }
 0x207   : > { %v4590_v1 = vpop.permute.xlu1 %2849  ;;  %v4592_v42 = vpop.permute.xlu0 %2839 }
 0x208   : > { %v2842_v50 = vunpack.i.h.bf16 %v4592_v42  ;;  %v2841_v7 = vunpack.i.l.bf16 %v4592_v42 }
 0x20b   : > { %v4594_v60 = vpop.permute.xlu1 %2854  ;;  %v4596_v57 = vpop.permute.xlu0 %2844 }
 0x20c   : > { %v2857_v54 = vunpack.i.h.bf16 %v4594_v60  ;;  %v2856_v41 = vunpack.i.l.bf16 %v4594_v60  ;;  %v2847_v59 = vunpack.i.h.bf16 %v4596_v57  ;;  %v2846_v47 = vunpack.i.l.bf16 %v4596_v57 }
 0x20f   : > { %v4598_v48 = vpop.permute.xlu1 %2296  ;;  %v4600_v5 = vpop.permute.xlu0 %2324 }
 0x213   : > { %v4602_v39 = vpop.permute.xlu1 %2304  ;;  %v4604_v32 = vpop.permute.xlu0 %2332 }
 0x217   : > { %v4606_v8 = vpop.permute.xlu1 %2312  ;;  %v4608_v26 = vpop.permute.xlu0 %2340 }
 0x21b   : > { %v2865_v12 = vpop.permute.xlu1 %2864  ;;  %v2860_v52 = vpop.permute.xlu0 %2859 }
 0x21c   : > { %v2867_v29 = vunpack.i.h.bf16 %v2865_v12  ;;  %v2866_v63 = vunpack.i.l.bf16 %v2865_v12  ;;  %v2862_v35 = vunpack.i.h.bf16 %v2860_v52  ;;  %v2861_v18 = vunpack.i.l.bf16 %v2860_v52 }
 0x21e   : > { %v2117_v30 = vsel %vm482_vm5, %v4263_v6, %v2867_v29  ;;  %v1652_v51 = vsel %vm482_vm5, %v4279_v0, %v2866_v63 }
 0x21f   : > { %v2870_v15 = vpop.permute.xlu1 %2869  ;;  %v2890_v22 = vpop.permute.xlu0 %2889 }
 0x220   : > { %v2872_v14 = vunpack.i.h.bf16 %v2870_v15  ;;  %v2871_v46 = vunpack.i.l.bf16 %v2870_v15  ;;  %v2892_v36 = vunpack.i.h.bf16 %v2890_v22  ;;  %v2891_v33 = vunpack.i.l.bf16 %v2890_v22 }
 0x222   : > { %v1894_v56 = vsel %vm482_vm5, %v4307_v40, %v2872_v14  ;;  %v1429_v38 = vsel %vm482_vm5, %v4288_v4, %v2871_v46  ;;  %v2124_v40 = vsel %vm482_vm5, %v4260_v24, %v2862_v35  ;;  %v1659_v4 = vsel %vm482_vm5, %v4274_v10, %v2861_v18 }
 0x223   : > { %v2875_v17 = vpop.permute.xlu1 %2874  ;;  %v2895_v55 = vpop.permute.xlu0 %2894  ;;  %v1430_v27 = vsel %vm484_vm6, %v1429_v38, %v2811_v16  ;;  %v1895_v12 = vsel %vm484_vm6, %v1894_v56, %v2812_v31  ;;  %v1660_v0 = vsel %vm484_vm6, %v1659_v4, %v2801_v62  ;;  %v2125_v63 = vsel %vm484_vm6, %v2124_v40, %v2802_v19 }
 0x224   : > { %v2877_v52 = vunpack.i.h.bf16 %v2875_v17  ;;  %v2876_v15 = vunpack.i.l.bf16 %v2875_v17  ;;  %v1653_v24 = vsel %vm484_vm6, %v1652_v51, %v2806_v9  ;;  %v2118_v10 = vsel %vm484_vm6, %v2117_v30, %v2807_v43 }
 0x225   : > { %v1431_v16 = vsel %vm486_vm7, %v1430_v27, %v2891_v33  ;;  %v1896_v31 = vsel %vm486_vm7, %v1895_v12, %v2892_v36  ;;  %v2897_v17 = vunpack.i.h.bf16 %v2895_v55  ;;  %v2896_v19 = vunpack.i.l.bf16 %v2895_v55 }
 0x226   : > { %v1661_v18 = vsel %vm486_vm7, %v1660_v0, %v2876_v15  ;;  %v2126_v62 = vsel %vm486_vm7, %v2125_v63, %v2877_v52  ;;  %v1432_v30 = vsel %vm488_vm8, %v1431_v16, %v2831_v3  ;;  %v1897_v51 = vsel %vm488_vm8, %v1896_v31, %v2832_v49 }
 0x227   : > { %v2880_v14 = vpop.permute.xlu1 %2879  ;;  %v2900_v46 = vpop.permute.xlu0 %2899  ;;  %v1662_v55 = vsel %vm488_vm8, %v1661_v18, %v2816_v28  ;;  %v2127_v40 = vsel %vm488_vm8, %v2126_v62, %v2817_v53 }
 0x228   : > { %v2882_v6 = vunpack.i.h.bf16 %v2880_v14  ;;  %v2881_v29 = vunpack.i.l.bf16 %v2880_v14  ;;  %v2902_v38 = vunpack.i.h.bf16 %v2900_v46  ;;  %v1663_v14 = vsel %vm490_vm9, %v1662_v55, %v2896_v19 }
 0x229   : > { %v1664_v42 = vsel %vm492_vm10, %v1663_v14, %v2836_v2 }
 0x22a   : > { %v1887_v35 = vsel %vm482_vm5, %v4337_v23, %v2882_v6  ;;  %v1422_v22 = vsel %vm482_vm5, %v4326_v45, %v2881_v29  ;;  %v2901_v45 = vunpack.i.l.bf16 %v2900_v46  ;;  %v2128_v46 = vsel %vm490_vm9, %v2127_v40, %v2897_v17 }
 0x22b   : > { %v2885_v56 = vpop.permute.xlu1 %2884  ;;  %v2905_v9 = vpop.permute.xlu0 %2904  ;;  %v1423_v43 = vsel %vm484_vm6, %v1422_v22, %v2821_v21  ;;  %v1888_v36 = vsel %vm484_vm6, %v1887_v35, %v2822_v20 }
 0x22c   : > { %v2887_v23 = vunpack.i.h.bf16 %v2885_v56  ;;  %v2886_v33 = vunpack.i.l.bf16 %v2885_v56  ;;  %v1889_v61 = vsel %vm486_vm7, %v1888_v36, %v2902_v38  ;;  %v1424_v20 = vsel %vm486_vm7, %v1423_v43, %v2901_v45 }
 0x22d   : > { %v2907_v12 = vunpack.i.h.bf16 %v2905_v9  ;;  %v2906_v53 = vunpack.i.l.bf16 %v2905_v9  ;;  %v1425_v44 = vsel %vm488_vm8, %v1424_v20, %v2841_v7 }
 0x22e   : > { %v1654_v4 = vsel %vm486_vm7, %v1653_v24, %v2886_v33  ;;  %v2119_v21 = vsel %vm486_vm7, %v2118_v10, %v2887_v23  ;;  %v4875_v23 = vunpack.i.h.bf16 %v4590_v1 }
 0x22f   : > { %v1655_v27 = vsel %vm488_vm8, %v1654_v4, %v2826_v37  ;;  %v2120_v49 = vsel %vm488_vm8, %v2119_v21, %v2827_v13  ;;  %v2910_v3 = vpop.permute.xlu1 %2909  ;;  %v2920_v28 = vpop.permute.xlu0 %2919  ;;  %v1890_v13 = vsel %vm488_vm8, %v1889_v61, %v2842_v50  ;;  %v2129_v50 = vsel %vm492_vm10, %v2128_v46, %v2837_v34 }
 0x230   : > { %v2912_v52 = vunpack.i.h.bf16 %v2910_v3  ;;  %v2911_v15 = vunpack.i.l.bf16 %v2910_v3  ;;  %v2922_v6 = vunpack.i.h.bf16 %v2920_v28  ;;  %v2921_v29 = vunpack.i.l.bf16 %v2920_v28 }
 0x231   : > { %v1656_v0 = vsel %vm490_vm9, %v1655_v27, %v2906_v53  ;;  %v2121_v37 = vsel %vm490_vm9, %v2120_v49, %v2907_v12 }
 0x232   : > { %v1433_v63 = vsel %vm490_vm9, %v1432_v30, %v2911_v15  ;;  %v1898_v24 = vsel %vm490_vm9, %v1897_v51, %v2912_v52  ;;  %v1426_v10 = vsel %vm490_vm9, %v1425_v44, %v2921_v29  ;;  %v1891_v16 = vsel %vm490_vm9, %v1890_v13, %v2922_v6 }
 0x233   : > { %v2915_v31 = vpop.permute.xlu1 %2914  ;;  %v2925_v35 = vpop.permute.xlu0 %2924  ;;  %v1657_v7 = vsel %vm492_vm10, %v1656_v0, %v2846_v47  ;;  %v2122_v19 = vsel %vm492_vm10, %v2121_v37, %v2847_v59  ;;  %v1427_v25 = vsel %vm492_vm10, %v1426_v10, %v2856_v41  ;;  %v1892_v34 = vsel %vm492_vm10, %v1891_v16, %v2857_v54 }
 0x234   : > { %v2917_v22 = vunpack.i.h.bf16 %v2915_v31  ;;  %v2916_v18 = vunpack.i.l.bf16 %v2915_v31  ;;  %v2927_v62 = vunpack.i.h.bf16 %v2925_v35  ;;  %v2926_v17 = vunpack.i.l.bf16 %v2925_v35 }
 0x235   : > { %v4874_v59 = vunpack.i.l.bf16 %v4590_v1  ;;  %v1899_v33 = vsel %vm492_vm10, %v1898_v24, %v4875_v23 }
 0x236   : > { %v1665_v56 = vsel %vm494_vm11, %v1664_v42, %v2916_v18  ;;  %v2130_v9 = vsel %vm494_vm11, %v2129_v50, %v2917_v22  ;;  %v1658_v43 = vsel %vm494_vm11, %v1657_v7, %v2926_v17  ;;  %v2123_v2 = vsel %vm494_vm11, %v2122_v19, %v2927_v62 }
 0x237   : > { %v2935_v36 = vpop.permute.xlu1 %2934  ;;  %v2930_v57 = vpop.permute.xlu0 %2929  ;;  %v1434_v47 = vsel %vm492_vm10, %v1433_v63, %v4874_v59  ;;  %v2376_v55 = vrot.slane %v1665_v56, 4  ;;  %v2382_v40 = vrot.slane %v2130_v9, 4  ;;  %v2375_v41 = vrot.slane %v1658_v43, 4 }
 0x238   : > { %v2937_v38 = vunpack.i.h.bf16 %v2935_v36  ;;  %v2936_v45 = vunpack.i.l.bf16 %v2935_v36  ;;  %v2932_v30 = vunpack.i.h.bf16 %v2930_v57  ;;  %v2931_v51 = vunpack.i.l.bf16 %v2930_v57 }
 0x239   : > { %v2381_v4 = vrot.slane %v2123_v2, 4 }
 0x23a   : > { %v1428_v60 = vsel %vm494_vm11, %v1427_v25, %v2936_v45  ;;  %v1893_v54 = vsel %vm494_vm11, %v1892_v34, %v2937_v38  ;;  %v1435_v21 = vsel %vm494_vm11, %v1434_v47, %v2931_v51  ;;  %v1900_v61 = vsel %vm494_vm11, %v1899_v33, %v2932_v30 }
 0x23b   : > { %v2293_v20 = vpop.permute.xlu1 %2292  ;;  %v2321_v1 = vpop.permute.xlu0 %2320  ;;  %v2391_v27 = vsel %vm2385_vm12, %v1435_v21, %v2376_v55  ;;  %v2393_v49 = vsel %vm2385_vm12, %v1900_v61, %v2382_v40  ;;  %v2390_v3 = vsel %vm2385_vm12, %v1428_v60, %v2375_v41  ;;  %v2392_v28 = vsel %vm2385_vm12, %v1893_v54, %v2381_v4 }
 0x23c   : > { %v2347_v12 = vsel %vm482_vm5, %v4401_v11, %v2293_v20  ;;  %v2354_v53 = vsel %vm482_vm5, %v4398_v58, %v2321_v1  ;;  %v2592_v52 = vpack.c.bf16 %v2393_v49, %v2391_v27  ;;  %v2594_v15 = vpack.c.bf16 %v2392_v28, %v2390_v3 }
 0x23d   : > { %v2348_v14 = vsel %vm484_vm6, %v2347_v12, %v4598_v48  ;;  %v2355_v6 = vsel %vm484_vm6, %v2354_v53, %v4600_v5 }
 0x23e   : > { %2593 = vmatprep.subr.bf16.mxu0 %v2592_v52 }
 0x23f   : > { %v2301_v46 = vpop.permute.xlu1 %2300  ;;  %v2329_v29 = vpop.permute.xlu0 %2328  ;;  %2595 = vmatpush1.bf16.msra.mxu0 %v2594_v15 }
 0x240   : > { %v2349_v0 = vsel %vm486_vm7, %v2348_v14, %v2301_v46  ;;  %v2356_v37 = vsel %vm486_vm7, %v2355_v6, %v2329_v29 }
 0x241   : > { %v2350_v11 = vsel %vm488_vm8, %v2349_v0, %v4602_v39  ;;  %v2357_v44 = vsel %vm488_vm8, %v2356_v37, %v4604_v32  ;;  %v288_v32 = vld [vmem:[%s4805_s1] sm:$0xff] }
 0x243   : > { %v2309_v58 = vpop.permute.xlu1 %2308  ;;  %v2337_v13 = vpop.permute.xlu0 %2336 }
 0x244   : > { %v2351_v48 = vsel %vm490_vm9, %v2350_v11, %v2309_v58  ;;  %v2358_v63 = vsel %vm490_vm9, %v2357_v44, %v2337_v13 }
 0x245   : > { %v2352_v5 = vsel %vm492_vm10, %v2351_v48, %v4606_v8  ;;  %v2359_v10 = vsel %vm492_vm10, %v2358_v63, %v4608_v26 }
 0x247   : > { %v2317_v24 = vpop.permute.xlu1 %2316  ;;  %v2345_v16 = vpop.permute.xlu0 %2344 }
 0x248   : > { %v2353_v39 = vsel %vm494_vm11, %v2352_v5, %v2317_v24  ;;  %v2360_v31 = vsel %vm494_vm11, %v2359_v10, %v2345_v16 }
 0x249   : > { %2578 = vmatprep.subr.msk.mxu0 %vm2385_vm12, %v2360_v31 }
 0x24a   : > { %2579 = vmatpush1.msk.msra.mxu0 %vm2385_vm12, %v2353_v39 }
 0x24b   : > { %2580 = vmatmul.mubr.msk.f32.vlgmr.msra.gmra.mrb[0].mxu0 %vm2399_vm13, %v288_v32 }
 0x258   : > { %v2397_v8 = vpop.permute.xlu0 %2396 }
 0x31e   : > { %v2475_v35 = vpop.f32.mrb[0].mxu0 }
 0x31f   : > { %v2476_v26 = vadd.f32 %v2475_v35, %v2397_v8  ;;  %v2477_v22 = vpop.f32.mrb[1].mxu0 }
 0x320   : > { %v2478_v18 = vadd.f32 %v2477_v22, %v2397_v8 }
 0x321   : > { %v2480_v62 = vmax.f32 %v2476_v26, 0.0 }
 0x322   : > { %v2481_v17 = vmax.f32 %v2478_v18, 0.0 }
 0x323   : > { %2482 = vst [vmem:[%s188_s11] sm:$0xff] %v2480_v62 }
 0x324   : > { %2483 = vst [vmem:[%s188_s11 + $0x8] sm:$0xff] %v2481_v17 }
 0x325   : > { %2982 = shalt.err (!%p2979_p2)
}
 0x326   : > { %s2983_s5 = scalar_lea.hbm %s4760_s7, 256  ;;  %s2987_s27 = scalar_lea.hbm %s4807_s3, 512 }
 0x327   : > { %p2984_p4 = scmp.ne.s32.totalorder %s4760_s7, %s2983_s5  ;;  %p2988_p9 = scmp.lt.u32.totalorder %s4760_s7, %s4807_s3 }
 0x328   : > { %p2989_p1 = scmp.lt.u32.totalorder %s2987_s27, %s2983_s5  ;;  %p2991_p6 = scmp.lt.u32.totalorder %s2983_s5, %s4760_s7 }
 0x329   : > { %p2985_p5 = pnand %p2984_p4, %p4876_p11 }
 0x32a   : > { %p2990_p3 = por %p2989_p1, %p2988_p9 }
 0x32b   : > { %p2986_p7 = pneg %p2985_p5 }
 0x32c   : > { %p2992_p12 = por %p2991_p6, %p2990_p3 }
 0x32e   : > { %p2993_p13 = pnand %p2992_p12, %p2986_p7 }
 0x330   : > { %2996 = shalt.err (!%p2993_p13)
}
 0x331   : > { %2598 = dma.vmem_to_hbm [thread:$0]  (%p4876_p11), %s4762_s4, 256, %s4760_s7, %s2485_s8  }
 0x332 PF: > { %s2511_s30 = sand.u32 1, %s3023_s12   ;;  %p4877_p8 = scmp.ne.s32.totalorder %s4828_s25, 0 }
 0x333   : > { %p4878_p10 = scmp.ge.s32.totalorder %s3035_s15, 2  ;;  %s2512_s9 = scalar_lea.sflag [#allocation4], %s2511_s30 }
 0x335   : > { %p2605_p0 = pnand %p4878_p10, %p4877_p8 }
 0x337   : > { %3018 = dma.done.wait (!%p2605_p0), %s2512_s9, 256  }
 0x338   : > { %3020 = vsyncadd (!%p2605_p0), %s2512_s9, 4294967040  ;;  %p16_p2 = scmp.ge.s32.totalorder %s3100_s18, 4   ;;  %s4879_s12 = smov %s3027_s13 }
 0x339   : > { %s4880_s13 = smov %s3031_s14  ;;  %s4881_s14 = smov %s3112_s21 }
 0x33a   : > { %s4882_s15 = smov %s3100_s18  ;;  %18 = sbr.rel (!%p16_p2) target bundleno = 5 (0x5), region = 77 }
 0x341   :  { %2517 = vsyncpa [#allocation3], 1 }
 0x342   :  { %2519 = vsyncpa [#allocation3 + $0x1], 1 }
 0x343   :  { %2520 = vsyncpa [#allocation4], 1 }
 0x344   :  { %2522 = vsyncpa [#allocation4 + $0x1], 1 }

</bundles_post_ra>
